<compile_context>
chip_gen: v7x
topology: tpu7x:2x2x1
jax: 0.10.0
libtpu: 0.0.40
codegen_flags: <defaults>
</compile_context>

<pallas_src>
import jax
import jax.numpy as jnp
from jax.experimental import pallas as pl
from jax.experimental.pallas import tpu as pltpu


# ----------------------------------------------------------------------------
# GradCamModel.forward equivalent (fused single pallas_call)
# ----------------------------------------------------------------------------
# TODO(synk): tensor.register_hook / activations_hook capture *gradients*
# during backward; that is autograd state, not forward compute, so it is not
# modeled here.
def grad_cam_forward(x_nchw, params):
    B, Cin, H, W = x_nchw.shape
    C1 = params["w1"].shape[-1]
    C2 = params["w2"].shape[-1]
    NC = params["w_fc"].shape[-1]
    HW = H * W
    N = B * HW                      # total spatial positions (lane axis)
    PAD = W + 1                     # max |tap shift| in the flattened layout

    # --- wrapper-side layout prep (tiny, constant-foldable under jit) ---
    x_flat = x_nchw.reshape(B, Cin, HW).astype(jnp.float32)        # no transpose
    w1t = params["w1"].reshape(9 * Cin, C1).T                      # (C1, 9*Cin)
    w2t = params["w2"].reshape(9 * C1, C2).T                       # (C2, 9*C1)
    b1c = params["b1"].reshape(C1, 1).astype(jnp.float32)
    b2c = params["b2"].reshape(C2, 1).astype(jnp.float32)
    bfc = params["b_fc"].reshape(1, NC).astype(jnp.float32)

    # Per-lane (row, col) indices within each image; XLA constant-folds this.
    hw_idx = jnp.arange(HW, dtype=jnp.int32)
    rc = jnp.stack(
        [jnp.tile(hw_idx // W, B), jnp.tile(hw_idx % W, B)], axis=0)  # (2, N)

    taps = [(ky - 1, kx - 1) for ky in range(3) for kx in range(3)]

    def kernel(rc_ref, x_ref, w1_ref, b1_ref, w2_ref, b2_ref, wfc_ref, bfc_ref,
               sel_ref, logits_ref,
               xflat_ref, a1flat_ref, col1_ref, col2_ref):
        # rc_ref:     (2, N) i32          per-lane (row, col) within an image
        # x_ref:      (B, Cin, HW) f32
        # w1_ref:     (C1, 9*Cin) f32     transposed im2col weights
        # w2_ref:     (C2, 9*C1)  f32
        # b1/b2_ref:  (C*, 1)     f32
        # wfc_ref:    (C2, NC), bfc_ref: (1, NC)
        # sel_ref:    (B, C2, HW) f32     captured eval-layer activation
        # logits_ref: (B, NC)     f32
        # xflat_ref:  (Cin, N + 2*PAD)    halo-extended flat input (f32 scratch)
        # a1flat_ref: (C1,  N + 2*PAD)    halo-extended flat conv1 act
        # col1_ref:   (9*Cin, N)          im2col matrix for conv1
        # col2_ref:   (9*C1,  N)          im2col matrix for conv2
        row = rc_ref[pl.ds(0, 1), :]                     # (1, N) i32
        col = rc_ref[pl.ds(1, 1), :]                     # (1, N) i32
        row_ok = {dy: jnp.logical_and(row + dy >= 0, row + dy < H)
                  for dy in (-1, 0, 1)}
        col_ok = {dx: jnp.logical_and(col + dx >= 0, col + dx < W)
                  for dx in (-1, 0, 1)}

        def build_cols(flat_ref, cin, col_ref):
            # Taps are lane-shifted slices of the extended flat buffer; every
            # out-of-image (or uninitialized-halo) lane is masked by a select,
            # so no zero-fill of the scratch is needed.
            for t, (dy, dx) in enumerate(taps):
                shifted = flat_ref[:, pl.ds(PAD + dy * W + dx, N)]   # (cin, N)
                mask = jnp.logical_and(row_ok[dy], col_ok[dx])       # (1, N)
                col_ref[pl.ds(t * cin, cin), :] = jnp.where(mask, shifted, 0.0)

        # ---- stage input channel-major, each image a contiguous 256-lane run
        for b in range(B):
            xflat_ref[:, pl.ds(PAD + b * HW, HW)] = x_ref[b]

        # ---- conv1 + ReLU: one MXU matmul (C1, 9*Cin) @ (9*Cin, N) ----
        build_cols(xflat_ref, Cin, col1_ref)
        a1 = jnp.dot(w1_ref[...], col1_ref[...],
                     preferred_element_type=jnp.float32)
        a1 = jnp.maximum(a1 + b1_ref[...], 0.0)                      # (C1, N)

        # ---- conv2 (eval_layer output, captured by the forward hook) ----
        a1flat_ref[:, pl.ds(PAD, N)] = a1
        build_cols(a1flat_ref, C1, col2_ref)
        a2 = jnp.dot(w2_ref[...], col2_ref[...],
                     preferred_element_type=jnp.float32)
        a2 = a2 + b2_ref[...]                                        # (C2, N)

        # Channel-major, lane-dense writeback of the captured activation.
        for b in range(B):
            sel_ref[b] = a2[:, b * HW:(b + 1) * HW].astype(sel_ref.dtype)

        # ---- head: ReLU + GAP + linear classifier on the VPU ----
        feat = jnp.maximum(a2, 0.0)
        inv_hw = jnp.float32(1.0 / HW)
        for b in range(B):
            pooled = jnp.sum(feat[:, b * HW:(b + 1) * HW],
                             axis=1, keepdims=True) * inv_hw          # (C2, 1)
            logits_b = jnp.sum(pooled * wfc_ref[...],
                               axis=0, keepdims=True) + bfc_ref[...]  # (1, NC)
            logits_ref[pl.ds(b, 1), :] = logits_b.astype(logits_ref.dtype)

    sel, logits = pl.pallas_call(
        kernel,
        out_shape=(
            jax.ShapeDtypeStruct((B, C2, HW), jnp.float32),
            jax.ShapeDtypeStruct((B, NC), jnp.float32),
        ),
        grid_spec=pltpu.PrefetchScalarGridSpec(
            num_scalar_prefetch=0,
            grid=(1,),
            in_specs=[
                pl.BlockSpec((2, N), lambda i: (0, 0)),
                pl.BlockSpec((B, Cin, HW), lambda i: (0, 0, 0)),
                pl.BlockSpec((C1, 9 * Cin), lambda i: (0, 0)),
                pl.BlockSpec((C1, 1), lambda i: (0, 0)),
                pl.BlockSpec((C2, 9 * C1), lambda i: (0, 0)),
                pl.BlockSpec((C2, 1), lambda i: (0, 0)),
                pl.BlockSpec((C2, NC), lambda i: (0, 0)),
                pl.BlockSpec((1, NC), lambda i: (0, 0)),
            ],
            out_specs=[
                pl.BlockSpec((B, C2, HW), lambda i: (0, 0, 0)),
                pl.BlockSpec((B, NC), lambda i: (0, 0)),
            ],
            scratch_shapes=[
                pltpu.VMEM((Cin, N + 2 * PAD), jnp.float32),
                pltpu.VMEM((C1, N + 2 * PAD), jnp.float32),
                pltpu.VMEM((9 * Cin, N), jnp.float32),
                pltpu.VMEM((9 * C1, N), jnp.float32),
            ],
        ),
        compiler_params=pltpu.CompilerParams(
            dimension_semantics=("arbitrary",)),
    )(rc, x_flat, w1t, b1c, w2t, b2c,
      params["w_fc"].astype(jnp.float32), bfc)

    selected_out = sel.reshape(B, C2, H, W)          # pure reshape, no transpose
    return logits, selected_out


# ----------------------------------------------------------------------------
# Pure-JAX reference for correctness
# ----------------------------------------------------------------------------
def reference_forward(x_nchw, params):
    dn = ("NHWC", "HWIO", "NHWC")
    x = jnp.transpose(x_nchw, (0, 2, 3, 1))
    a1 = jax.lax.conv_general_dilated(
        x, params["w1"], (1, 1), "SAME", dimension_numbers=dn) + params["b1"]
    a1 = jnp.maximum(a1, 0.0)
    a2 = jax.lax.conv_general_dilated(
        a1, params["w2"], (1, 1), "SAME", dimension_numbers=dn) + params["b2"]
    feat = jnp.maximum(a2, 0.0)
    pooled = jnp.mean(feat, axis=(1, 2))
    logits = pooled @ params["w_fc"] + params["b_fc"]
    return logits, jnp.transpose(a2, (0, 3, 1, 2))


if __name__ == "__main__":
    B, Cin, H, W = 2, 4, 16, 16
    C1, C2, NUM_CLASSES = 8, 16, 10

    key = jax.random.PRNGKey(0)
    kx, k1, k2, k3, k4, k5, k6 = jax.random.split(key, 7)

    x = jax.random.normal(kx, (B, Cin, H, W), jnp.float32)      # NCHW like PyTorch
    params = {
        "w1": 0.1 * jax.random.normal(k1, (3, 3, Cin, C1), jnp.float32),
        "b1": 0.1 * jax.random.normal(k2, (C1,), jnp.float32),
        "w2": 0.1 * jax.random.normal(k3, (3, 3, C1, C2), jnp.float32),
        "b2": 0.1 * jax.random.normal(k4, (C2,), jnp.float32),
        "w_fc": 0.1 * jax.random.normal(k5, (C2, NUM_CLASSES), jnp.float32),
        "b_fc": 0.1 * jax.random.normal(k6, (NUM_CLASSES,), jnp.float32),
    }

    logits, selected_out = jax.block_until_ready(
        jax.jit(grad_cam_forward)(x, params))
    ref_logits, ref_selected = jax.block_until_ready(
        jax.jit(reference_forward)(x, params))

    assert logits.shape == (B, NUM_CLASSES)
    assert selected_out.shape == (B, C2, H, W)
    assert jnp.allclose(logits, ref_logits, rtol=1e-2, atol=1e-2)
    assert jnp.allclose(selected_out, ref_selected, rtol=1e-2, atol=1e-2)

    print("KERNEL_OK")
</pallas_src>

<mosaic_0001>
module attributes {stable_mosaic.version = 11 : i64} {
  func.func @kernel(%arg0: i32, %arg1: memref<2x512xi32, #tpu.memory_space<vmem>>, %arg2: memref<2x4x256xf32, #tpu.memory_space<vmem>>, %arg3: memref<8x36xf32, #tpu.memory_space<vmem>>, %arg4: memref<8x1xf32, #tpu.memory_space<vmem>>, %arg5: memref<16x72xf32, #tpu.memory_space<vmem>>, %arg6: memref<16x1xf32, #tpu.memory_space<vmem>>, %arg7: memref<16x10xf32, #tpu.memory_space<vmem>>, %arg8: memref<1x10xf32, #tpu.memory_space<vmem>>, %arg9: memref<2x16x256xf32, #tpu.memory_space<vmem>>, %arg10: memref<2x10xf32, #tpu.memory_space<vmem>>, %arg11: memref<4x546xf32, #tpu.memory_space<vmem>>, %arg12: memref<8x546xf32, #tpu.memory_space<vmem>>, %arg13: memref<36x512xf32, #tpu.memory_space<vmem>>, %arg14: memref<72x512xf32, #tpu.memory_space<vmem>>) attributes {dimension_semantics = [#tpu.dimension_semantics<arbitrary>], iteration_bounds = array<i64: 1>, scalar_prefetch = 0 : i64, scratch_operands = 4 : i64, tpu.core_type = #tpu.core_type<tc>, window_params = [{pipeline_mode = #tpu.pipeline_mode<synchronous>, transform_indices = @transform_0, window_bounds = array<i64: 2, 512>}, {pipeline_mode = #tpu.pipeline_mode<synchronous>, transform_indices = @transform_1, window_bounds = array<i64: 2, 4, 256>}, {pipeline_mode = #tpu.pipeline_mode<synchronous>, transform_indices = @transform_2, window_bounds = array<i64: 8, 36>}, {pipeline_mode = #tpu.pipeline_mode<synchronous>, transform_indices = @transform_3, window_bounds = array<i64: 8, 1>}, {pipeline_mode = #tpu.pipeline_mode<synchronous>, transform_indices = @transform_4, window_bounds = array<i64: 16, 72>}, {pipeline_mode = #tpu.pipeline_mode<synchronous>, transform_indices = @transform_5, window_bounds = array<i64: 16, 1>}, {pipeline_mode = #tpu.pipeline_mode<synchronous>, transform_indices = @transform_6, window_bounds = array<i64: 16, 10>}, {pipeline_mode = #tpu.pipeline_mode<synchronous>, transform_indices = @transform_7, window_bounds = array<i64: 1, 10>}, {pipeline_mode = #tpu.pipeline_mode<synchronous>, transform_indices = @transform_8, window_bounds = array<i64: 2, 16, 256>}, {pipeline_mode = #tpu.pipeline_mode<synchronous>, transform_indices = @transform_9, window_bounds = array<i64: 2, 10>}]} {
    %c0 = arith.constant 0 : index
    %c0_0 = arith.constant 0 : index
    %0 = vector.load %arg1[%c0, %c0_0] : memref<2x512xi32, #tpu.memory_space<vmem>>, vector<1x512xi32>
    %c1 = arith.constant 1 : index
    %c0_1 = arith.constant 0 : index
    %1 = vector.load %arg1[%c1, %c0_1] : memref<2x512xi32, #tpu.memory_space<vmem>>, vector<1x512xi32>
    %c-1_i32 = arith.constant -1 : i32
    %2 = vector.broadcast %c-1_i32 : i32 to vector<1x512xi32>
    %3 = arith.addi %0, %2 : vector<1x512xi32>
    %c0_i32 = arith.constant 0 : i32
    %4 = vector.broadcast %c0_i32 : i32 to vector<1x512xi32>
    %5 = arith.cmpi sge, %3, %4 : vector<1x512xi32>
    %c-1_i32_2 = arith.constant -1 : i32
    %6 = vector.broadcast %c-1_i32_2 : i32 to vector<1x512xi32>
    %7 = arith.addi %0, %6 : vector<1x512xi32>
    %c16_i32 = arith.constant 16 : i32
    %8 = vector.broadcast %c16_i32 : i32 to vector<1x512xi32>
    %9 = arith.cmpi slt, %7, %8 : vector<1x512xi32>
    %10 = arith.andi %5, %9 : vector<1x512xi1>
    %c0_i32_3 = arith.constant 0 : i32
    %11 = vector.broadcast %c0_i32_3 : i32 to vector<1x512xi32>
    %12 = arith.addi %0, %11 : vector<1x512xi32>
    %c0_i32_4 = arith.constant 0 : i32
    %13 = vector.broadcast %c0_i32_4 : i32 to vector<1x512xi32>
    %14 = arith.cmpi sge, %12, %13 : vector<1x512xi32>
    %c0_i32_5 = arith.constant 0 : i32
    %15 = vector.broadcast %c0_i32_5 : i32 to vector<1x512xi32>
    %16 = arith.addi %0, %15 : vector<1x512xi32>
    %c16_i32_6 = arith.constant 16 : i32
    %17 = vector.broadcast %c16_i32_6 : i32 to vector<1x512xi32>
    %18 = arith.cmpi slt, %16, %17 : vector<1x512xi32>
    %19 = arith.andi %14, %18 : vector<1x512xi1>
    %c1_i32 = arith.constant 1 : i32
    %20 = vector.broadcast %c1_i32 : i32 to vector<1x512xi32>
    %21 = arith.addi %0, %20 : vector<1x512xi32>
    %c0_i32_7 = arith.constant 0 : i32
    %22 = vector.broadcast %c0_i32_7 : i32 to vector<1x512xi32>
    %23 = arith.cmpi sge, %21, %22 : vector<1x512xi32>
    %c1_i32_8 = arith.constant 1 : i32
    %24 = vector.broadcast %c1_i32_8 : i32 to vector<1x512xi32>
    %25 = arith.addi %0, %24 : vector<1x512xi32>
    %c16_i32_9 = arith.constant 16 : i32
    %26 = vector.broadcast %c16_i32_9 : i32 to vector<1x512xi32>
    %27 = arith.cmpi slt, %25, %26 : vector<1x512xi32>
    %28 = arith.andi %23, %27 : vector<1x512xi1>
    %c-1_i32_10 = arith.constant -1 : i32
    %29 = vector.broadcast %c-1_i32_10 : i32 to vector<1x512xi32>
    %30 = arith.addi %1, %29 : vector<1x512xi32>
    %c0_i32_11 = arith.constant 0 : i32
    %31 = vector.broadcast %c0_i32_11 : i32 to vector<1x512xi32>
    %32 = arith.cmpi sge, %30, %31 : vector<1x512xi32>
    %c-1_i32_12 = arith.constant -1 : i32
    %33 = vector.broadcast %c-1_i32_12 : i32 to vector<1x512xi32>
    %34 = arith.addi %1, %33 : vector<1x512xi32>
    %c16_i32_13 = arith.constant 16 : i32
    %35 = vector.broadcast %c16_i32_13 : i32 to vector<1x512xi32>
    %36 = arith.cmpi slt, %34, %35 : vector<1x512xi32>
    %37 = arith.andi %32, %36 : vector<1x512xi1>
    %c0_i32_14 = arith.constant 0 : i32
    %38 = vector.broadcast %c0_i32_14 : i32 to vector<1x512xi32>
    %39 = arith.addi %1, %38 : vector<1x512xi32>
    %c0_i32_15 = arith.constant 0 : i32
    %40 = vector.broadcast %c0_i32_15 : i32 to vector<1x512xi32>
    %41 = arith.cmpi sge, %39, %40 : vector<1x512xi32>
    %c0_i32_16 = arith.constant 0 : i32
    %42 = vector.broadcast %c0_i32_16 : i32 to vector<1x512xi32>
    %43 = arith.addi %1, %42 : vector<1x512xi32>
    %c16_i32_17 = arith.constant 16 : i32
    %44 = vector.broadcast %c16_i32_17 : i32 to vector<1x512xi32>
    %45 = arith.cmpi slt, %43, %44 : vector<1x512xi32>
    %46 = arith.andi %41, %45 : vector<1x512xi1>
    %c1_i32_18 = arith.constant 1 : i32
    %47 = vector.broadcast %c1_i32_18 : i32 to vector<1x512xi32>
    %48 = arith.addi %1, %47 : vector<1x512xi32>
    %c0_i32_19 = arith.constant 0 : i32
    %49 = vector.broadcast %c0_i32_19 : i32 to vector<1x512xi32>
    %50 = arith.cmpi sge, %48, %49 : vector<1x512xi32>
    %c1_i32_20 = arith.constant 1 : i32
    %51 = vector.broadcast %c1_i32_20 : i32 to vector<1x512xi32>
    %52 = arith.addi %1, %51 : vector<1x512xi32>
    %c16_i32_21 = arith.constant 16 : i32
    %53 = vector.broadcast %c16_i32_21 : i32 to vector<1x512xi32>
    %54 = arith.cmpi slt, %52, %53 : vector<1x512xi32>
    %55 = arith.andi %50, %54 : vector<1x512xi1>
    %c0_22 = arith.constant 0 : index
    %c0_23 = arith.constant 0 : index
    %c0_24 = arith.constant 0 : index
    %56 = vector.load %arg2[%c0_22, %c0_23, %c0_24] : memref<2x4x256xf32, #tpu.memory_space<vmem>>, vector<1x4x256xf32>
    %57 = vector.shape_cast %56 : vector<1x4x256xf32> to vector<4x256xf32>
    %c0_25 = arith.constant 0 : index
    %c17 = arith.constant 17 : index
    %58 = vector.load %arg11[%c0_25, %c17] : memref<4x546xf32, #tpu.memory_space<vmem>>, vector<4x256xf32>
    tpu.vector_store %arg11[%c0_25, %c17], %57 {strides = array<i32>} : memref<4x546xf32, #tpu.memory_space<vmem>>, vector<4x256xf32>,
    %c1_26 = arith.constant 1 : index
    %c0_27 = arith.constant 0 : index
    %c0_28 = arith.constant 0 : index
    %59 = vector.load %arg2[%c1_26, %c0_27, %c0_28] : memref<2x4x256xf32, #tpu.memory_space<vmem>>, vector<1x4x256xf32>
    %60 = vector.shape_cast %59 : vector<1x4x256xf32> to vector<4x256xf32>
    %c0_29 = arith.constant 0 : index
    %c273 = arith.constant 273 : index
    %61 = vector.load %arg11[%c0_29, %c273] : memref<4x546xf32, #tpu.memory_space<vmem>>, vector<4x256xf32>
    tpu.vector_store %arg11[%c0_29, %c273], %60 {strides = array<i32>} : memref<4x546xf32, #tpu.memory_space<vmem>>, vector<4x256xf32>,
    %c0_30 = arith.constant 0 : index
    %c0_31 = arith.constant 0 : index
    %62 = vector.load %arg11[%c0_30, %c0_31] : memref<4x546xf32, #tpu.memory_space<vmem>>, vector<4x512xf32>
    %63 = arith.andi %10, %37 : vector<1x512xi1>
    %cst = arith.constant 0.000000e+00 : f32
    %64 = vector.shape_cast %63 : vector<1x512xi1> to vector<1x512xi1>
    %65 = vector.broadcast %64 : vector<1x512xi1> to vector<4x512xi1>
    %66 = vector.broadcast %cst : f32 to vector<4x512xf32>
    %67 = arith.select %65, %62, %66 : vector<4x512xi1>, vector<4x512xf32>
    %c0_32 = arith.constant 0 : index
    %c0_33 = arith.constant 0 : index
    %68 = vector.load %arg13[%c0_32, %c0_33] : memref<36x512xf32, #tpu.memory_space<vmem>>, vector<4x512xf32>
    tpu.vector_store %arg13[%c0_32, %c0_33], %67 {strides = array<i32>} : memref<36x512xf32, #tpu.memory_space<vmem>>, vector<4x512xf32>,
    %c0_34 = arith.constant 0 : index
    %c1_35 = arith.constant 1 : index
    %69 = vector.load %arg11[%c0_34, %c1_35] : memref<4x546xf32, #tpu.memory_space<vmem>>, vector<4x512xf32>
    %70 = arith.andi %10, %46 : vector<1x512xi1>
    %cst_36 = arith.constant 0.000000e+00 : f32
    %71 = vector.shape_cast %70 : vector<1x512xi1> to vector<1x512xi1>
    %72 = vector.broadcast %71 : vector<1x512xi1> to vector<4x512xi1>
    %73 = vector.broadcast %cst_36 : f32 to vector<4x512xf32>
    %74 = arith.select %72, %69, %73 : vector<4x512xi1>, vector<4x512xf32>
    %c4 = arith.constant 4 : index
    %c0_37 = arith.constant 0 : index
    %75 = vector.load %arg13[%c4, %c0_37] : memref<36x512xf32, #tpu.memory_space<vmem>>, vector<4x512xf32>
    tpu.vector_store %arg13[%c4, %c0_37], %74 {strides = array<i32>} : memref<36x512xf32, #tpu.memory_space<vmem>>, vector<4x512xf32>,
    %c0_38 = arith.constant 0 : index
    %c2 = arith.constant 2 : index
    %76 = vector.load %arg11[%c0_38, %c2] : memref<4x546xf32, #tpu.memory_space<vmem>>, vector<4x512xf32>
    %77 = arith.andi %10, %55 : vector<1x512xi1>
    %cst_39 = arith.constant 0.000000e+00 : f32
    %78 = vector.shape_cast %77 : vector<1x512xi1> to vector<1x512xi1>
    %79 = vector.broadcast %78 : vector<1x512xi1> to vector<4x512xi1>
    %80 = vector.broadcast %cst_39 : f32 to vector<4x512xf32>
    %81 = arith.select %79, %76, %80 : vector<4x512xi1>, vector<4x512xf32>
    %c8 = arith.constant 8 : index
    %c0_40 = arith.constant 0 : index
    %82 = vector.load %arg13[%c8, %c0_40] : memref<36x512xf32, #tpu.memory_space<vmem>>, vector<4x512xf32>
    tpu.vector_store %arg13[%c8, %c0_40], %81 {strides = array<i32>} : memref<36x512xf32, #tpu.memory_space<vmem>>, vector<4x512xf32>,
    %c0_41 = arith.constant 0 : index
    %c16 = arith.constant 16 : index
    %83 = vector.load %arg11[%c0_41, %c16] : memref<4x546xf32, #tpu.memory_space<vmem>>, vector<4x512xf32>
    %84 = arith.andi %19, %37 : vector<1x512xi1>
    %cst_42 = arith.constant 0.000000e+00 : f32
    %85 = vector.shape_cast %84 : vector<1x512xi1> to vector<1x512xi1>
    %86 = vector.broadcast %85 : vector<1x512xi1> to vector<4x512xi1>
    %87 = vector.broadcast %cst_42 : f32 to vector<4x512xf32>
    %88 = arith.select %86, %83, %87 : vector<4x512xi1>, vector<4x512xf32>
    %c12 = arith.constant 12 : index
    %c0_43 = arith.constant 0 : index
    %89 = vector.load %arg13[%c12, %c0_43] : memref<36x512xf32, #tpu.memory_space<vmem>>, vector<4x512xf32>
    tpu.vector_store %arg13[%c12, %c0_43], %88 {strides = array<i32>} : memref<36x512xf32, #tpu.memory_space<vmem>>, vector<4x512xf32>,
    %c0_44 = arith.constant 0 : index
    %c17_45 = arith.constant 17 : index
    %90 = vector.load %arg11[%c0_44, %c17_45] : memref<4x546xf32, #tpu.memory_space<vmem>>, vector<4x512xf32>
    %91 = arith.andi %19, %46 : vector<1x512xi1>
    %cst_46 = arith.constant 0.000000e+00 : f32
    %92 = vector.shape_cast %91 : vector<1x512xi1> to vector<1x512xi1>
    %93 = vector.broadcast %92 : vector<1x512xi1> to vector<4x512xi1>
    %94 = vector.broadcast %cst_46 : f32 to vector<4x512xf32>
    %95 = arith.select %93, %90, %94 : vector<4x512xi1>, vector<4x512xf32>
    %c16_47 = arith.constant 16 : index
    %c0_48 = arith.constant 0 : index
    %96 = vector.load %arg13[%c16_47, %c0_48] : memref<36x512xf32, #tpu.memory_space<vmem>>, vector<4x512xf32>
    tpu.vector_store %arg13[%c16_47, %c0_48], %95 {strides = array<i32>} : memref<36x512xf32, #tpu.memory_space<vmem>>, vector<4x512xf32>,
    %c0_49 = arith.constant 0 : index
    %c18 = arith.constant 18 : index
    %97 = vector.load %arg11[%c0_49, %c18] : memref<4x546xf32, #tpu.memory_space<vmem>>, vector<4x512xf32>
    %98 = arith.andi %19, %55 : vector<1x512xi1>
    %cst_50 = arith.constant 0.000000e+00 : f32
    %99 = vector.shape_cast %98 : vector<1x512xi1> to vector<1x512xi1>
    %100 = vector.broadcast %99 : vector<1x512xi1> to vector<4x512xi1>
    %101 = vector.broadcast %cst_50 : f32 to vector<4x512xf32>
    %102 = arith.select %100, %97, %101 : vector<4x512xi1>, vector<4x512xf32>
    %c20 = arith.constant 20 : index
    %c0_51 = arith.constant 0 : index
    %103 = vector.load %arg13[%c20, %c0_51] : memref<36x512xf32, #tpu.memory_space<vmem>>, vector<4x512xf32>
    tpu.vector_store %arg13[%c20, %c0_51], %102 {strides = array<i32>} : memref<36x512xf32, #tpu.memory_space<vmem>>, vector<4x512xf32>,
    %c0_52 = arith.constant 0 : index
    %c32 = arith.constant 32 : index
    %104 = vector.load %arg11[%c0_52, %c32] : memref<4x546xf32, #tpu.memory_space<vmem>>, vector<4x512xf32>
    %105 = arith.andi %28, %37 : vector<1x512xi1>
    %cst_53 = arith.constant 0.000000e+00 : f32
    %106 = vector.shape_cast %105 : vector<1x512xi1> to vector<1x512xi1>
    %107 = vector.broadcast %106 : vector<1x512xi1> to vector<4x512xi1>
    %108 = vector.broadcast %cst_53 : f32 to vector<4x512xf32>
    %109 = arith.select %107, %104, %108 : vector<4x512xi1>, vector<4x512xf32>
    %c24 = arith.constant 24 : index
    %c0_54 = arith.constant 0 : index
    %110 = vector.load %arg13[%c24, %c0_54] : memref<36x512xf32, #tpu.memory_space<vmem>>, vector<4x512xf32>
    tpu.vector_store %arg13[%c24, %c0_54], %109 {strides = array<i32>} : memref<36x512xf32, #tpu.memory_space<vmem>>, vector<4x512xf32>,
    %c0_55 = arith.constant 0 : index
    %c33 = arith.constant 33 : index
    %111 = vector.load %arg11[%c0_55, %c33] : memref<4x546xf32, #tpu.memory_space<vmem>>, vector<4x512xf32>
    %112 = arith.andi %28, %46 : vector<1x512xi1>
    %cst_56 = arith.constant 0.000000e+00 : f32
    %113 = vector.shape_cast %112 : vector<1x512xi1> to vector<1x512xi1>
    %114 = vector.broadcast %113 : vector<1x512xi1> to vector<4x512xi1>
    %115 = vector.broadcast %cst_56 : f32 to vector<4x512xf32>
    %116 = arith.select %114, %111, %115 : vector<4x512xi1>, vector<4x512xf32>
    %c28 = arith.constant 28 : index
    %c0_57 = arith.constant 0 : index
    %117 = vector.load %arg13[%c28, %c0_57] : memref<36x512xf32, #tpu.memory_space<vmem>>, vector<4x512xf32>
    tpu.vector_store %arg13[%c28, %c0_57], %116 {strides = array<i32>} : memref<36x512xf32, #tpu.memory_space<vmem>>, vector<4x512xf32>,
    %c0_58 = arith.constant 0 : index
    %c34 = arith.constant 34 : index
    %118 = vector.load %arg11[%c0_58, %c34] : memref<4x546xf32, #tpu.memory_space<vmem>>, vector<4x512xf32>
    %119 = arith.andi %28, %55 : vector<1x512xi1>
    %cst_59 = arith.constant 0.000000e+00 : f32
    %120 = vector.shape_cast %119 : vector<1x512xi1> to vector<1x512xi1>
    %121 = vector.broadcast %120 : vector<1x512xi1> to vector<4x512xi1>
    %122 = vector.broadcast %cst_59 : f32 to vector<4x512xf32>
    %123 = arith.select %121, %118, %122 : vector<4x512xi1>, vector<4x512xf32>
    %c32_60 = arith.constant 32 : index
    %c0_61 = arith.constant 0 : index
    %124 = vector.load %arg13[%c32_60, %c0_61] : memref<36x512xf32, #tpu.memory_space<vmem>>, vector<4x512xf32>
    tpu.vector_store %arg13[%c32_60, %c0_61], %123 {strides = array<i32>} : memref<36x512xf32, #tpu.memory_space<vmem>>, vector<4x512xf32>,
    %c0_62 = arith.constant 0 : index
    %c0_63 = arith.constant 0 : index
    %125 = vector.load %arg3[%c0_62, %c0_63] : memref<8x36xf32, #tpu.memory_space<vmem>>, vector<8x36xf32>
    %c0_64 = arith.constant 0 : index
    %c0_65 = arith.constant 0 : index
    %126 = vector.load %arg13[%c0_64, %c0_65] : memref<36x512xf32, #tpu.memory_space<vmem>>, vector<36x512xf32>
    %cst_66 = arith.constant dense<0.000000e+00> : vector<8x512xf32>
    %127 = tpu.matmul %125, %126, %cst_66 {dimension_numbers = #tpu.dot_dimension_numbers<[1], [0], [0], [1], [0, 0, 1, 1], [], []>} : vector<8x36xf32>, vector<36x512xf32>, vector<8x512xf32> -> vector<8x512xf32>
    %c0_67 = arith.constant 0 : index
    %c0_68 = arith.constant 0 : index
    %128 = vector.load %arg4[%c0_67, %c0_68] : memref<8x1xf32, #tpu.memory_space<vmem>>, vector<8x1xf32>
    %129 = vector.broadcast %128 : vector<8x1xf32> to vector<8x512xf32>
    %130 = arith.addf %127, %129 : vector<8x512xf32>
    %cst_69 = arith.constant 0.000000e+00 : f32
    %131 = vector.broadcast %cst_69 : f32 to vector<8x512xf32>
    %132 = arith.maximumf %130, %131 : vector<8x512xf32>
    %c0_70 = arith.constant 0 : index
    %c17_71 = arith.constant 17 : index
    %133 = vector.load %arg12[%c0_70, %c17_71] : memref<8x546xf32, #tpu.memory_space<vmem>>, vector<8x512xf32>
    tpu.vector_store %arg12[%c0_70, %c17_71], %132 {strides = array<i32>} : memref<8x546xf32, #tpu.memory_space<vmem>>, vector<8x512xf32>,
    %c0_72 = arith.constant 0 : index
    %c0_73 = arith.constant 0 : index
    %134 = vector.load %arg12[%c0_72, %c0_73] : memref<8x546xf32, #tpu.memory_space<vmem>>, vector<8x512xf32>
    %135 = arith.andi %10, %37 : vector<1x512xi1>
    %cst_74 = arith.constant 0.000000e+00 : f32
    %136 = vector.shape_cast %135 : vector<1x512xi1> to vector<1x512xi1>
    %137 = vector.broadcast %136 : vector<1x512xi1> to vector<8x512xi1>
    %138 = vector.broadcast %cst_74 : f32 to vector<8x512xf32>
    %139 = arith.select %137, %134, %138 : vector<8x512xi1>, vector<8x512xf32>
    %c0_75 = arith.constant 0 : index
    %c0_76 = arith.constant 0 : index
    %140 = vector.load %arg14[%c0_75, %c0_76] : memref<72x512xf32, #tpu.memory_space<vmem>>, vector<8x512xf32>
    tpu.vector_store %arg14[%c0_75, %c0_76], %139 {strides = array<i32>} : memref<72x512xf32, #tpu.memory_space<vmem>>, vector<8x512xf32>,
    %c0_77 = arith.constant 0 : index
    %c1_78 = arith.constant 1 : index
    %141 = vector.load %arg12[%c0_77, %c1_78] : memref<8x546xf32, #tpu.memory_space<vmem>>, vector<8x512xf32>
    %142 = arith.andi %10, %46 : vector<1x512xi1>
    %cst_79 = arith.constant 0.000000e+00 : f32
    %143 = vector.shape_cast %142 : vector<1x512xi1> to vector<1x512xi1>
    %144 = vector.broadcast %143 : vector<1x512xi1> to vector<8x512xi1>
    %145 = vector.broadcast %cst_79 : f32 to vector<8x512xf32>
    %146 = arith.select %144, %141, %145 : vector<8x512xi1>, vector<8x512xf32>
    %c8_80 = arith.constant 8 : index
    %c0_81 = arith.constant 0 : index
    %147 = vector.load %arg14[%c8_80, %c0_81] : memref<72x512xf32, #tpu.memory_space<vmem>>, vector<8x512xf32>
    tpu.vector_store %arg14[%c8_80, %c0_81], %146 {strides = array<i32>} : memref<72x512xf32, #tpu.memory_space<vmem>>, vector<8x512xf32>,
    %c0_82 = arith.constant 0 : index
    %c2_83 = arith.constant 2 : index
    %148 = vector.load %arg12[%c0_82, %c2_83] : memref<8x546xf32, #tpu.memory_space<vmem>>, vector<8x512xf32>
    %149 = arith.andi %10, %55 : vector<1x512xi1>
    %cst_84 = arith.constant 0.000000e+00 : f32
    %150 = vector.shape_cast %149 : vector<1x512xi1> to vector<1x512xi1>
    %151 = vector.broadcast %150 : vector<1x512xi1> to vector<8x512xi1>
    %152 = vector.broadcast %cst_84 : f32 to vector<8x512xf32>
    %153 = arith.select %151, %148, %152 : vector<8x512xi1>, vector<8x512xf32>
    %c16_85 = arith.constant 16 : index
    %c0_86 = arith.constant 0 : index
    %154 = vector.load %arg14[%c16_85, %c0_86] : memref<72x512xf32, #tpu.memory_space<vmem>>, vector<8x512xf32>
    tpu.vector_store %arg14[%c16_85, %c0_86], %153 {strides = array<i32>} : memref<72x512xf32, #tpu.memory_space<vmem>>, vector<8x512xf32>,
    %c0_87 = arith.constant 0 : index
    %c16_88 = arith.constant 16 : index
    %155 = vector.load %arg12[%c0_87, %c16_88] : memref<8x546xf32, #tpu.memory_space<vmem>>, vector<8x512xf32>
    %156 = arith.andi %19, %37 : vector<1x512xi1>
    %cst_89 = arith.constant 0.000000e+00 : f32
    %157 = vector.shape_cast %156 : vector<1x512xi1> to vector<1x512xi1>
    %158 = vector.broadcast %157 : vector<1x512xi1> to vector<8x512xi1>
    %159 = vector.broadcast %cst_89 : f32 to vector<8x512xf32>
    %160 = arith.select %158, %155, %159 : vector<8x512xi1>, vector<8x512xf32>
    %c24_90 = arith.constant 24 : index
    %c0_91 = arith.constant 0 : index
    %161 = vector.load %arg14[%c24_90, %c0_91] : memref<72x512xf32, #tpu.memory_space<vmem>>, vector<8x512xf32>
    tpu.vector_store %arg14[%c24_90, %c0_91], %160 {strides = array<i32>} : memref<72x512xf32, #tpu.memory_space<vmem>>, vector<8x512xf32>,
    %c0_92 = arith.constant 0 : index
    %c17_93 = arith.constant 17 : index
    %162 = vector.load %arg12[%c0_92, %c17_93] : memref<8x546xf32, #tpu.memory_space<vmem>>, vector<8x512xf32>
    %163 = arith.andi %19, %46 : vector<1x512xi1>
    %cst_94 = arith.constant 0.000000e+00 : f32
    %164 = vector.shape_cast %163 : vector<1x512xi1> to vector<1x512xi1>
    %165 = vector.broadcast %164 : vector<1x512xi1> to vector<8x512xi1>
    %166 = vector.broadcast %cst_94 : f32 to vector<8x512xf32>
    %167 = arith.select %165, %162, %166 : vector<8x512xi1>, vector<8x512xf32>
    %c32_95 = arith.constant 32 : index
    %c0_96 = arith.constant 0 : index
    %168 = vector.load %arg14[%c32_95, %c0_96] : memref<72x512xf32, #tpu.memory_space<vmem>>, vector<8x512xf32>
    tpu.vector_store %arg14[%c32_95, %c0_96], %167 {strides = array<i32>} : memref<72x512xf32, #tpu.memory_space<vmem>>, vector<8x512xf32>,
    %c0_97 = arith.constant 0 : index
    %c18_98 = arith.constant 18 : index
    %169 = vector.load %arg12[%c0_97, %c18_98] : memref<8x546xf32, #tpu.memory_space<vmem>>, vector<8x512xf32>
    %170 = arith.andi %19, %55 : vector<1x512xi1>
    %cst_99 = arith.constant 0.000000e+00 : f32
    %171 = vector.shape_cast %170 : vector<1x512xi1> to vector<1x512xi1>
    %172 = vector.broadcast %171 : vector<1x512xi1> to vector<8x512xi1>
    %173 = vector.broadcast %cst_99 : f32 to vector<8x512xf32>
    %174 = arith.select %172, %169, %173 : vector<8x512xi1>, vector<8x512xf32>
    %c40 = arith.constant 40 : index
    %c0_100 = arith.constant 0 : index
    %175 = vector.load %arg14[%c40, %c0_100] : memref<72x512xf32, #tpu.memory_space<vmem>>, vector<8x512xf32>
    tpu.vector_store %arg14[%c40, %c0_100], %174 {strides = array<i32>} : memref<72x512xf32, #tpu.memory_space<vmem>>, vector<8x512xf32>,
    %c0_101 = arith.constant 0 : index
    %c32_102 = arith.constant 32 : index
    %176 = vector.load %arg12[%c0_101, %c32_102] : memref<8x546xf32, #tpu.memory_space<vmem>>, vector<8x512xf32>
    %177 = arith.andi %28, %37 : vector<1x512xi1>
    %cst_103 = arith.constant 0.000000e+00 : f32
    %178 = vector.shape_cast %177 : vector<1x512xi1> to vector<1x512xi1>
    %179 = vector.broadcast %178 : vector<1x512xi1> to vector<8x512xi1>
    %180 = vector.broadcast %cst_103 : f32 to vector<8x512xf32>
    %181 = arith.select %179, %176, %180 : vector<8x512xi1>, vector<8x512xf32>
    %c48 = arith.constant 48 : index
    %c0_104 = arith.constant 0 : index
    %182 = vector.load %arg14[%c48, %c0_104] : memref<72x512xf32, #tpu.memory_space<vmem>>, vector<8x512xf32>
    tpu.vector_store %arg14[%c48, %c0_104], %181 {strides = array<i32>} : memref<72x512xf32, #tpu.memory_space<vmem>>, vector<8x512xf32>,
    %c0_105 = arith.constant 0 : index
    %c33_106 = arith.constant 33 : index
    %183 = vector.load %arg12[%c0_105, %c33_106] : memref<8x546xf32, #tpu.memory_space<vmem>>, vector<8x512xf32>
    %184 = arith.andi %28, %46 : vector<1x512xi1>
    %cst_107 = arith.constant 0.000000e+00 : f32
    %185 = vector.shape_cast %184 : vector<1x512xi1> to vector<1x512xi1>
    %186 = vector.broadcast %185 : vector<1x512xi1> to vector<8x512xi1>
    %187 = vector.broadcast %cst_107 : f32 to vector<8x512xf32>
    %188 = arith.select %186, %183, %187 : vector<8x512xi1>, vector<8x512xf32>
    %c56 = arith.constant 56 : index
    %c0_108 = arith.constant 0 : index
    %189 = vector.load %arg14[%c56, %c0_108] : memref<72x512xf32, #tpu.memory_space<vmem>>, vector<8x512xf32>
    tpu.vector_store %arg14[%c56, %c0_108], %188 {strides = array<i32>} : memref<72x512xf32, #tpu.memory_space<vmem>>, vector<8x512xf32>,
    %c0_109 = arith.constant 0 : index
    %c34_110 = arith.constant 34 : index
    %190 = vector.load %arg12[%c0_109, %c34_110] : memref<8x546xf32, #tpu.memory_space<vmem>>, vector<8x512xf32>
    %191 = arith.andi %28, %55 : vector<1x512xi1>
    %cst_111 = arith.constant 0.000000e+00 : f32
    %192 = vector.shape_cast %191 : vector<1x512xi1> to vector<1x512xi1>
    %193 = vector.broadcast %192 : vector<1x512xi1> to vector<8x512xi1>
    %194 = vector.broadcast %cst_111 : f32 to vector<8x512xf32>
    %195 = arith.select %193, %190, %194 : vector<8x512xi1>, vector<8x512xf32>
    %c64 = arith.constant 64 : index
    %c0_112 = arith.constant 0 : index
    %196 = vector.load %arg14[%c64, %c0_112] : memref<72x512xf32, #tpu.memory_space<vmem>>, vector<8x512xf32>
    tpu.vector_store %arg14[%c64, %c0_112], %195 {strides = array<i32>} : memref<72x512xf32, #tpu.memory_space<vmem>>, vector<8x512xf32>,
    %c0_113 = arith.constant 0 : index
    %c0_114 = arith.constant 0 : index
    %197 = vector.load %arg5[%c0_113, %c0_114] : memref<16x72xf32, #tpu.memory_space<vmem>>, vector<16x72xf32>
    %c0_115 = arith.constant 0 : index
    %c0_116 = arith.constant 0 : index
    %198 = vector.load %arg14[%c0_115, %c0_116] : memref<72x512xf32, #tpu.memory_space<vmem>>, vector<72x512xf32>
    %cst_117 = arith.constant dense<0.000000e+00> : vector<16x512xf32>
    %199 = tpu.matmul %197, %198, %cst_117 {dimension_numbers = #tpu.dot_dimension_numbers<[1], [0], [0], [1], [0, 0, 1, 1], [], []>} : vector<16x72xf32>, vector<72x512xf32>, vector<16x512xf32> -> vector<16x512xf32>
    %c0_118 = arith.constant 0 : index
    %c0_119 = arith.constant 0 : index
    %200 = vector.load %arg6[%c0_118, %c0_119] : memref<16x1xf32, #tpu.memory_space<vmem>>, vector<16x1xf32>
    %201 = vector.broadcast %200 : vector<16x1xf32> to vector<16x512xf32>
    %202 = arith.addf %199, %201 : vector<16x512xf32>
    %203 = vector.extract_strided_slice %202 {offsets = [0, 0], sizes = [16, 256], strides = [1, 1]} : vector<16x512xf32> to vector<16x256xf32>
    %c0_120 = arith.constant 0 : index
    %c0_121 = arith.constant 0 : index
    %c0_122 = arith.constant 0 : index
    %204 = vector.load %arg9[%c0_120, %c0_121, %c0_122] : memref<2x16x256xf32, #tpu.memory_space<vmem>>, vector<1x16x256xf32>
    %205 = vector.shape_cast %204 : vector<1x16x256xf32> to vector<16x256xf32>
    %206 = vector.shape_cast %203 : vector<16x256xf32> to vector<1x16x256xf32>
    tpu.vector_store %arg9[%c0_120, %c0_121, %c0_122], %206 {strides = array<i32>} : memref<2x16x256xf32, #tpu.memory_space<vmem>>, vector<1x16x256xf32>,
    %207 = vector.extract_strided_slice %202 {offsets = [0, 256], sizes = [16, 256], strides = [1, 1]} : vector<16x512xf32> to vector<16x256xf32>
    %c1_123 = arith.constant 1 : index
    %c0_124 = arith.constant 0 : index
    %c0_125 = arith.constant 0 : index
    %208 = vector.load %arg9[%c1_123, %c0_124, %c0_125] : memref<2x16x256xf32, #tpu.memory_space<vmem>>, vector<1x16x256xf32>
    %209 = vector.shape_cast %208 : vector<1x16x256xf32> to vector<16x256xf32>
    %210 = vector.shape_cast %207 : vector<16x256xf32> to vector<1x16x256xf32>
    tpu.vector_store %arg9[%c1_123, %c0_124, %c0_125], %210 {strides = array<i32>} : memref<2x16x256xf32, #tpu.memory_space<vmem>>, vector<1x16x256xf32>,
    %cst_126 = arith.constant 0.000000e+00 : f32
    %211 = vector.broadcast %cst_126 : f32 to vector<16x512xf32>
    %212 = arith.maximumf %202, %211 : vector<16x512xf32>
    %213 = vector.extract_strided_slice %212 {offsets = [0, 0], sizes = [16, 256], strides = [1, 1]} : vector<16x512xf32> to vector<16x256xf32>
    %cst_127 = arith.constant dense<0.000000e+00> : vector<16xf32>
    %214 = vector.multi_reduction <add>, %213, %cst_127 [1] : vector<16x256xf32> to vector<16xf32>
    %215 = vector.shape_cast %214 : vector<16xf32> to vector<16x1xf32>
    %cst_128 = arith.constant 3.906250e-03 : f32
    %216 = vector.broadcast %cst_128 : f32 to vector<16x1xf32>
    %217 = arith.mulf %215, %216 : vector<16x1xf32>
    %c0_129 = arith.constant 0 : index
    %c0_130 = arith.constant 0 : index
    %218 = vector.load %arg7[%c0_129, %c0_130] : memref<16x10xf32, #tpu.memory_space<vmem>>, vector<16x10xf32>
    %219 = vector.broadcast %217 : vector<16x1xf32> to vector<16x10xf32>
    %220 = arith.mulf %219, %218 : vector<16x10xf32>
    %cst_131 = arith.constant dense<0.000000e+00> : vector<10xf32>
    %221 = vector.multi_reduction <add>, %220, %cst_131 [0] : vector<16x10xf32> to vector<10xf32>
    %222 = vector.shape_cast %221 : vector<10xf32> to vector<1x10xf32>
    %c0_132 = arith.constant 0 : index
    %c0_133 = arith.constant 0 : index
    %223 = vector.load %arg8[%c0_132, %c0_133] : memref<1x10xf32, #tpu.memory_space<vmem>>, vector<1x10xf32>
    %224 = arith.addf %222, %223 : vector<1x10xf32>
    %c0_134 = arith.constant 0 : index
    %c0_135 = arith.constant 0 : index
    %225 = vector.load %arg10[%c0_134, %c0_135] : memref<2x10xf32, #tpu.memory_space<vmem>>, vector<1x10xf32>
    tpu.vector_store %arg10[%c0_134, %c0_135], %224 {strides = array<i32>} : memref<2x10xf32, #tpu.memory_space<vmem>>, vector<1x10xf32>,
    %226 = vector.extract_strided_slice %212 {offsets = [0, 256], sizes = [16, 256], strides = [1, 1]} : vector<16x512xf32> to vector<16x256xf32>
    %cst_136 = arith.constant dense<0.000000e+00> : vector<16xf32>
    %227 = vector.multi_reduction <add>, %226, %cst_136 [1] : vector<16x256xf32> to vector<16xf32>
    %228 = vector.shape_cast %227 : vector<16xf32> to vector<16x1xf32>
    %cst_137 = arith.constant 3.906250e-03 : f32
    %229 = vector.broadcast %cst_137 : f32 to vector<16x1xf32>
    %230 = arith.mulf %228, %229 : vector<16x1xf32>
    %c0_138 = arith.constant 0 : index
    %c0_139 = arith.constant 0 : index
    %231 = vector.load %arg7[%c0_138, %c0_139] : memref<16x10xf32, #tpu.memory_space<vmem>>, vector<16x10xf32>
    %232 = vector.broadcast %230 : vector<16x1xf32> to vector<16x10xf32>
    %233 = arith.mulf %232, %231 : vector<16x10xf32>
    %cst_140 = arith.constant dense<0.000000e+00> : vector<10xf32>
    %234 = vector.multi_reduction <add>, %233, %cst_140 [0] : vector<16x10xf32> to vector<10xf32>
    %235 = vector.shape_cast %234 : vector<10xf32> to vector<1x10xf32>
    %c0_141 = arith.constant 0 : index
    %c0_142 = arith.constant 0 : index
    %236 = vector.load %arg8[%c0_141, %c0_142] : memref<1x10xf32, #tpu.memory_space<vmem>>, vector<1x10xf32>
    %237 = arith.addf %235, %236 : vector<1x10xf32>
    %c1_143 = arith.constant 1 : index
    %c0_144 = arith.constant 0 : index
    %238 = vector.load %arg10[%c1_143, %c0_144] : memref<2x10xf32, #tpu.memory_space<vmem>>, vector<1x10xf32>
    tpu.vector_store %arg10[%c1_143, %c0_144], %237 {strides = array<i32>} : memref<2x10xf32, #tpu.memory_space<vmem>>, vector<1x10xf32>,
    return
  }
  func.func @transform_0(%arg0: i32) -> (i32, i32) {
    %c0_i32 = arith.constant 0 : i32
    %c0_i32_0 = arith.constant 0 : i32
    %c0_i32_1 = arith.constant 0 : i32
    return %c0_i32, %c0_i32_0 : i32, i32
  }
  func.func @transform_1(%arg0: i32) -> (i32, i32, i32) {
    %c0_i32 = arith.constant 0 : i32
    %c0_i32_0 = arith.constant 0 : i32
    %c0_i32_1 = arith.constant 0 : i32
    %c0_i32_2 = arith.constant 0 : i32
    return %c0_i32, %c0_i32_0, %c0_i32_1 : i32, i32, i32
  }
  func.func @transform_2(%arg0: i32) -> (i32, i32) {
    %c0_i32 = arith.constant 0 : i32
    %c0_i32_0 = arith.constant 0 : i32
    %c0_i32_1 = arith.constant 0 : i32
    return %c0_i32, %c0_i32_0 : i32, i32
  }
  func.func @transform_3(%arg0: i32) -> (i32, i32) {
    %c0_i32 = arith.constant 0 : i32
    %c0_i32_0 = arith.constant 0 : i32
    %c0_i32_1 = arith.constant 0 : i32
    return %c0_i32, %c0_i32_0 : i32, i32
  }
  func.func @transform_4(%arg0: i32) -> (i32, i32) {
    %c0_i32 = arith.constant 0 : i32
    %c0_i32_0 = arith.constant 0 : i32
    %c0_i32_1 = arith.constant 0 : i32
    return %c0_i32, %c0_i32_0 : i32, i32
  }
  func.func @transform_5(%arg0: i32) -> (i32, i32) {
    %c0_i32 = arith.constant 0 : i32
    %c0_i32_0 = arith.constant 0 : i32
    %c0_i32_1 = arith.constant 0 : i32
    return %c0_i32, %c0_i32_0 : i32, i32
  }
  func.func @transform_6(%arg0: i32) -> (i32, i32) {
    %c0_i32 = arith.constant 0 : i32
    %c0_i32_0 = arith.constant 0 : i32
    %c0_i32_1 = arith.constant 0 : i32
    return %c0_i32, %c0_i32_0 : i32, i32
  }
  func.func @transform_7(%arg0: i32) -> (i32, i32) {
    %c0_i32 = arith.constant 0 : i32
    %c0_i32_0 = arith.constant 0 : i32
    %c0_i32_1 = arith.constant 0 : i32
    return %c0_i32, %c0_i32_0 : i32, i32
  }
  func.func @transform_8(%arg0: i32) -> (i32, i32, i32) {
    %c0_i32 = arith.constant 0 : i32
    %c0_i32_0 = arith.constant 0 : i32
    %c0_i32_1 = arith.constant 0 : i32
    %c0_i32_2 = arith.constant 0 : i32
    return %c0_i32, %c0_i32_0, %c0_i32_1 : i32, i32, i32
  }
  func.func @transform_9(%arg0: i32) -> (i32, i32) {
    %c0_i32 = arith.constant 0 : i32
    %c0_i32_0 = arith.constant 0 : i32
    %c0_i32_1 = arith.constant 0 : i32
    return %c0_i32, %c0_i32_0 : i32, i32
  }
}

</mosaic_0001>

<bundles_post_ra>
// kernel: grad_cam_forward.1
= control target key start
LH: loop header
LB: loop body
LE: loop exit
PB: predicated region body
PF: predicated region fallthrough
CT: control target
= control target key end

     0   :  { %s1663_s11 = smov 17   ;;  %v1664_v2 = vmov 0   ;;  %s2526_s0 = inlined_call_operand.vmem [shape: s32[2,512], index: 0, kind: input, shape index: {}]   ;;  %s2527_s1 = inlined_call_operand.vmem [shape: f32[2,4,256], index: 1, kind: input, shape index: {}]   ;;  %s2528_s2 = inlined_call_operand.vmem [shape: f32[8,36], index: 2, kind: input, shape index: {}]   ;;  %s2529_s3 = inlined_call_operand.vmem [shape: f32[8,1], index: 3, kind: input, shape index: {}]   ;;  %s2530_s4 = inlined_call_operand.vmem [shape: f32[16,72], index: 4, kind: input, shape index: {}]   ;;  %s2531_s5 = inlined_call_operand.vmem [shape: f32[16,1], index: 5, kind: input, shape index: {}]   ;;  %s2532_s6 = inlined_call_operand.vmem [shape: f32[16,10], index: 6, kind: input, shape index: {}]   ;;  %s2533_s7 = inlined_call_operand.vmem [shape: f32[1,10], index: 7, kind: input, shape index: {}]   ;;  %s2534_s8 = inlined_call_operand.vmem [shape: f32[2,16,256], index: 8, kind: output, shape index: {0}]   ;;  %s2535_s9 = inlined_call_operand.hbm [shape: f32[2,10], index: 9, kind: output, shape index: {1}]  }
   0x1   :  { %v57_v0 = vld [vmem:[%s2527_s1] sm:$0xff]  ;;  %v1438_v1 = vld [vmem:[%s2527_s1 + $0x8] sm:$0xff]  ;;  %1565 = vset.pattern.permute.xlu0 %v1664_v2  ;;  %1636 = vset.pattern.permute.xlu1 %v1664_v2 }
   0x2   :  { %59 = vrot.lane.b32.xlu0 %v57_v0, %s1663_s11 }
   0x3   :  { %15 = vsyncpa [#allocation7], 0  ;;  %v1738_v3 = vld [vmem:[%s2526_s0] ss:$2 sm:$0xf]  ;;  %v87_v7 = vlaneseq  ;;  %v2582_v9 = vmov 0 }
   0x4   :  { %v1743_v4 = vld [vmem:[%s2526_s0 + $0x1] ss:$2 sm:$0xf]  ;;  %v35_v5 = vadd.s32 4294967295, %v1738_v3  ;;  %vm66_vm6 = vcmask 1043592   ;;  %vm67_vm7 = vcmask 1047556  }
   0x5   :  { %v46_v6 = vadd.s32 4294967295, %v1743_v4  ;;  %v88_v10 = vshrl.u32 %v87_v7, 7  ;;  %vm2536_vm9 = vcmask 138240   ;;  %vm70_vm10 = vcmask 134144   ;;  %vm68_vm11 = vmor %vm67_vm7, %vm66_vm6  ;;  %s1665_s0 = smov 110   ;;  %s1666_s1 = smov 127  }
   0x6   :  { %75 = vrot.lane.b32.xlu0 %v1438_v1, %s1663_s11  ;;  %vm36_vm0 = vcmp.ge.s32.totalorder %v35_v5, 0  ;;  %vm37_vm1 = vcmp.lt.s32.totalorder %v35_v5, 16  ;;  %v2584_v24 = vmov 0  ;;  %v2586_v30 = vmov 0  ;;  %s1667_s18 = smov 95   ;;  %s1668_s19 = smov 112  }
   0x7   :  { %vm47_vm2 = vcmp.ge.s32.totalorder %v46_v6, 0  ;;  %vm48_vm3 = vcmp.lt.s32.totalorder %v46_v6, 16  ;;  %vm1747_vm4 = vmand %vm36_vm0, %vm37_vm1  ;;  %v1759_v13 = vsub.s32 0, %v88_v10  ;;  %v1763_v18 = vsub.s32 1, %v88_v10  ;;  %s1669_s20 = smov 111   ;;  %s1670_s21 = smov 126  }
   0x8   :  { %vm1751_vm5 = vmand %vm47_vm2, %vm48_vm3  ;;  %v1766_v20 = vsub.s32 2, %v88_v10  ;;  %v1769_v22 = vsub.s32 3, %v88_v10  ;;  %v2588_v33 = vmov 0  ;;  %v2590_v36 = vmov 0  ;;  %s1671_s22 = smov 96   ;;  %s1672_s23 = smov 94  }
   0x9   :  { %v2583_v9 = vsel %vm1751_vm5, 4294967295, %v2582_v9  ;;  %vm85_vm8 = vmand %vm1747_vm4, %vm1751_vm5  ;;  %v1673_v46 = vmov 0.0   ;;  %v646_v47 = vld [vmem:[%s2529_s3] sm:$0xff]  ;;  %v53_v56 = vadd.s32 1, %v1743_v4  ;;  %vm50_vm0 = vcmp.ge.s32.totalorder %v1743_v4, 0  ;;  %s1674_s29 = smov [#allocation6]  }
   0xa   :  { %v86_v14 = vsel %vm85_vm8, 1, %v1664_v2  ;;  %804 = vmatprep.mubr.f32.mxu1 %v1673_v46  ;;  %733 = vmatprep.mubr.f32.mxu0 %v1673_v46  ;;  %vm51_vm1 = vcmp.lt.s32.totalorder %v1743_v4, 16  ;;  %vm39_vm2 = vcmp.ge.s32.totalorder %v1738_v3, 0  ;;  %vm40_vm3 = vcmp.lt.s32.totalorder %v1738_v3, 16 }
   0xb   :  { %v90_v19 = vrot.slane %v86_v14, %v1759_v13  ;;  %v94_v23 = vrot.slane %v86_v14, %v1763_v18  ;;  %v98_v25 = vrot.slane %v86_v14, %v1766_v20  ;;  %v102_v29 = vrot.slane %v86_v14, %v1769_v22  ;;  %vm1894_vm8 = vmand %vm50_vm0, %vm51_vm1 }
   0xc   :  { %vm54_vm6 = vcmp.ge.s32.totalorder %v53_v56, 0  ;;  %vm55_vm7 = vcmp.lt.s32.totalorder %v53_v56, 16  ;;  %v42_v62 = vadd.s32 1, %v1738_v3  ;;  %v2596_v0 = vmov 0  ;;  %vm124_vm0 = vmand %vm1747_vm4, %vm1894_vm8 }
   0xd   :  { %vm1772_vm12 = vcmp.eq.s32.totalorder %v90_v19, 1  ;;  %vm1787_vm13 = vcmp.eq.s32.totalorder %v94_v23, 1  ;;  %vm1791_vm14 = vcmp.eq.s32.totalorder %v98_v25, 1  ;;  %vm1800_vm15 = vcmp.eq.s32.totalorder %v102_v29, 1 }
   0xe   :  { %v2585_v24 = vsel %vm1772_vm12, 4294967295, %v2584_v24  ;;  %v2587_v30 = vsel %vm1787_vm13, 4294967295, %v2586_v30  ;;  %v2589_v33 = vsel %vm1791_vm14, 4294967295, %v2588_v33  ;;  %v2591_v36 = vsel %vm1800_vm15, 4294967295, %v2590_v36 }
   0xf   :  { %vm43_vm1 = vcmp.ge.s32.totalorder %v42_v62, 0  ;;  %v125_v3 = vsel %vm124_vm0, 1, %v1664_v2  ;;  %v2598_v5 = vmov 0  ;;  %v2626_v63 = vmov 0 }
  0x10   :  { %v137_v23 = vrot.slane %v125_v3, %v1766_v20  ;;  %v141_v25 = vrot.slane %v125_v3, %v1769_v22 }
  0x74   :  { %v60_v11 = vpop.permute.xlu0 %59 }
  0x75   :  { %v61_v12 = vrot.slane %v60_v11, 4 }
  0x77   :  { %v63_v15 = vsel %vm2536_vm9, %v61_v12, %v60_v11  ;;  %71 = vst.msk [vmem:[#allocation2 + $0x8] sm:$0xf] %vm70_vm10, %v61_v12  ;;  %v129_v11 = vrot.slane %v125_v3, %v1759_v13  ;;  %v133_v12 = vrot.slane %v125_v3, %v1763_v18 }
  0x78   :  { %69 = vst.msk [vmem:[#allocation2] sm:$0xff] %vm68_vm11, %v63_v15  ;;  %v76_v16 = vpop.permute.xlu0 %75 }
  0x79   :  { %v77_v17 = vrot.slane %v76_v16, 4  ;;  %vm1948_vm0 = vcmp.eq.s32.totalorder %v129_v11, 1 }
  0x7b   :  { %v78_v21 = vsel %vm2536_vm9, %v77_v17, %v76_v16  ;;  %82 = vst.msk [vmem:[#allocation2 + $0x10] sm:$0xf] %vm70_vm10, %v77_v17  ;;  %vm1899_vm10 = vmand %vm39_vm2, %vm40_vm3  ;;  %vm44_vm9 = vcmp.lt.s32.totalorder %v42_v62, 16 }
  0x7c   :  { %81 = vst.msk [vmem:[#allocation2 + $0x8] sm:$0xff] %vm68_vm11, %v78_v21  ;;  %vm1903_vm11 = vmand %vm54_vm6, %vm55_vm7 }
  0x7d   :  { %v2597_v0 = vsel %vm1903_vm11, 4294967295, %v2596_v0  ;;  %vm376_vm2 = vmand %vm1899_vm10, %vm1903_vm11 }
  0x7e   :  { %vm1920_vm3 = vmand %vm43_vm1, %vm44_vm9  ;;  %v377_v10 = vsel %vm376_vm2, 1, %v1664_v2  ;;  %vm1952_vm1 = vcmp.eq.s32.totalorder %v133_v12, 1  ;;  %vm1979_vm2 = vcmp.eq.s32.totalorder %v141_v25, 1 }
  0x7f   :  { %v1777_v26 = vld [vmem:[#allocation2] sm:$0xff]  ;;  %v2599_v5 = vsel %vm1920_vm3, 4294967295, %v2598_v5  ;;  %vm502_vm6 = vmand %vm1920_vm3, %vm1894_vm8  ;;  %v381_v14 = vrot.slane %v377_v10, %v1759_v13  ;;  %v385_v15 = vrot.slane %v377_v10, %v1763_v18  ;;  %v389_v16 = vrot.slane %v377_v10, %v1766_v20 }
  0x80   :  { %v1781_v27 = vcombine.high %v1777_v26, %v1777_v26  ;;  %v113_v28 = vsel %vm1772_vm12, %v1777_v26, 0.0  ;;  %v393_v17 = vrot.slane %v377_v10, %v1769_v22  ;;  %vm250_vm9 = vmand %vm1899_vm10, %vm1751_vm5 }
  0x81   :  { %117 = vst [vmem:[#allocation4] sm:$0xf] %v113_v28  ;;  %v2602_v28 = vmov 0  ;;  %v251_v29 = vsel %vm250_vm9, 1, %v1664_v2  ;;  %vm1957_vm12 = vcmp.eq.s32.totalorder %v381_v14, 1  ;;  %vm1975_vm9 = vcmp.eq.s32.totalorder %v137_v23, 1 }
  0x82   :  { %v375_v31 = vld [vmem:[#allocation2 + $0x10] sm:$0xf]  ;;  %v114_v35 = vsel %vm1787_vm13, %v1781_v27, 0.0  ;;  %v2603_v28 = vsel %vm1952_vm1, 4294967295, %v2602_v28  ;;  %vm1961_vm13 = vcmp.eq.s32.totalorder %v385_v15, 1  ;;  %vm1969_vm7 = vcmp.eq.s32.totalorder %v393_v17, 1 }
  0x83   :  { %v123_v32 = vld [vmem:[#allocation2 + $0x10] sm:$0xf]  ;;  %411 = vrot.lane.b32.xlu0 %v375_v31, %s1665_s0  ;;  %v122_v34 = vld [vmem:[#allocation2 + $0x8] sm:$0xff]  ;;  %118 = vst [vmem:[#allocation4 + $0x8] sm:$0xf] %v114_v35  ;;  %v2604_v31 = vmov 0  ;;  %v263_v12 = vrot.slane %v251_v29, %v1766_v20  ;;  %v267_v14 = vrot.slane %v251_v29, %v1769_v22 }
  0x84   :  { %159 = vrot.lane.b32.xlu1 %v123_v32, %s1666_s1  ;;  %v150_v37 = vcombine.high %v122_v34, %v122_v34  ;;  %v115_v38 = vsel %vm1791_vm14, %v122_v34, 0.0  ;;  %v501_v39 = vld [vmem:[#allocation2 + $0x10] sm:$0xf]  ;;  %v2605_v31 = vsel %vm1957_vm12, 4294967295, %v2604_v31  ;;  %v2606_v32 = vmov 0 }
  0x85   :  { %v249_v40 = vld [vmem:[#allocation2 + $0x10] sm:$0xf]  ;;  %119 = vst [vmem:[#allocation4 + $0x10] sm:$0xf] %v115_v38  ;;  %v2607_v32 = vsel %vm1961_vm13, 4294967295, %v2606_v32  ;;  %v2610_v35 = vmov 0 }
  0x86   :  { %v116_v41 = vsel %vm1800_vm15, %v150_v37, 0.0  ;;  %v318_v42 = vld [vmem:[#allocation2 + $0x10] sm:$0xf]  ;;  %v2611_v35 = vsel %vm1969_vm7, 4294967295, %v2610_v35  ;;  %vm2616_vm14 = vcmask 1039360   ;;  %v2618_v17 = vmov 0 }
  0x87   :  { %537 = vrot.lane.b32.xlu0 %v501_v39, %s1667_s18  ;;  %120 = vst [vmem:[#allocation4 + $0x18] sm:$0xf] %v116_v41  ;;  %v192_v43 = vld [vmem:[#allocation2 + $0x10] sm:$0xf]  ;;  %v2612_v39 = vmov 0  ;;  %vm2617_vm15 = vmmov %vm2616_vm14  ;;  %v2620_v23 = vmov 0 }
  0x88   :  { %285 = vrot.lane.b32.xlu1 %v249_v40, %s1668_s19  ;;  %v444_v44 = vld [vmem:[#allocation2 + $0x10] sm:$0xf]  ;;  %v2613_v39 = vsel %vm1975_vm9, 4294967295, %v2612_v39  ;;  %v2614_v40 = vmov 0 }
  0x89   :  { %v570_v45 = vld [vmem:[#allocation2 + $0x10] sm:$0xf]  ;;  %v2615_v40 = vsel %vm1979_vm2, 4294967295, %v2614_v40 }
  0x8b   :  { %354 = vrot.lane.b32.xlu0 %v318_v42, %s1669_s20 }
  0x8c   :  { %228 = vrot.lane.b32.xlu1 %v192_v43, %s1670_s21 }
  0x8f   :  { %480 = vrot.lane.b32.xlu0 %v444_v44, %s1671_s22 }
  0x90   :  { %155 = vrot.lane.b32.xlu1 %v122_v34, %s1666_s1 }
  0x93   :  { %151 = vrot.lane.b32.xlu0 %v1777_v26, %s1666_s1 }
  0x94   :  { %281 = vrot.lane.b32.xlu1 %v122_v34, %s1668_s19 }
  0x97   :  { %220 = vrot.lane.b32.xlu0 %v1777_v26, %s1670_s21 }
  0x98   :  { %277 = vrot.lane.b32.xlu1 %v1777_v26, %s1668_s19 }
  0x9b   :  { %407 = vrot.lane.b32.xlu0 %v122_v34, %s1665_s0 }
  0x9c   :  { %224 = vrot.lane.b32.xlu1 %v122_v34, %s1670_s21 }
  0x9f   :  { %533 = vrot.lane.b32.xlu0 %v122_v34, %s1667_s18 }
  0xa0   :  { %403 = vrot.lane.b32.xlu1 %v1777_v26, %s1665_s0 }
  0xa3   :  { %529 = vrot.lane.b32.xlu0 %v1777_v26, %s1667_s18 }
  0xa4   :  { %346 = vrot.lane.b32.xlu1 %v1777_v26, %s1669_s20 }
  0xa7   :  { %350 = vrot.lane.b32.xlu0 %v122_v34, %s1669_s20 }
  0xa8   :  { %153 = vrot.lane.b32.xlu1 %v1781_v27, %s1666_s1 }
  0xab   :  { %476 = vrot.lane.b32.xlu0 %v122_v34, %s1671_s22 }
  0xac   :  { %405 = vrot.lane.b32.xlu1 %v1781_v27, %s1665_s0 }
  0xaf   :  { %157 = vrot.lane.b32.xlu0 %v150_v37, %s1666_s1 }
  0xb0   :  { %409 = vrot.lane.b32.xlu1 %v150_v37, %s1665_s0 }
  0xb3   :  { %279 = vrot.lane.b32.xlu0 %v1781_v27, %s1668_s19 }
  0xb4   :  { %531 = vrot.lane.b32.xlu1 %v1781_v27, %s1667_s18 }
  0xb7   :  { %283 = vrot.lane.b32.xlu0 %v150_v37, %s1668_s19 }
  0xb8   :  { %535 = vrot.lane.b32.xlu1 %v150_v37, %s1667_s18 }
  0xbb   :  { %222 = vrot.lane.b32.xlu0 %v1781_v27, %s1670_s21 }
  0xbc   :  { %348 = vrot.lane.b32.xlu1 %v1781_v27, %s1669_s20 }
  0xbf   :  { %226 = vrot.lane.b32.xlu0 %v150_v37, %s1670_s21 }
  0xc0   :  { %352 = vrot.lane.b32.xlu1 %v150_v37, %s1669_s20 }
  0xc3   :  { %472 = vrot.lane.b32.xlu0 %v1777_v26, %s1671_s22 }
  0xc4   :  { %474 = vrot.lane.b32.xlu1 %v1781_v27, %s1671_s22 }
  0xc7   :  { %602 = vrot.lane.b32.xlu0 %v122_v34, %s1672_s23  ;;  %v2608_v34 = vmov 0 }
  0xc8   :  { %478 = vrot.lane.b32.xlu1 %v150_v37, %s1671_s22 }
  0xcb   :  { %606 = vrot.lane.b32.xlu0 %v570_v45, %s1672_s23  ;;  %v255_v45 = vrot.slane %v251_v29, %v1759_v13 }
  0xcc   :  { %600 = vrot.lane.b32.xlu1 %v1781_v27, %s1672_s23  ;;  %v2600_v27 = vmov 0 }
  0xcd   :  { %v2601_v27 = vsel %vm1948_vm0, 4294967295, %v2600_v27 }
  0xcf   :  { %649 = vperm.xlu0 %1565, %v646_v47   ;;  %v259_v47 = vrot.slane %v251_v29, %v1763_v18 }
  0xd0   :  { %604 = vrot.lane.b32.xlu1 %v150_v37, %s1672_s23 }
  0xd4   :  { %598 = vrot.lane.b32.xlu1 %v1777_v26, %s1672_s23  ;;  %v503_v26 = vsel %vm502_vm6, 1, %v1664_v2  ;;  %vm1965_vm6 = vcmp.eq.s32.totalorder %v389_v16, 1 }
  0xd5   :  { %v2609_v34 = vsel %vm1965_vm6, 4294967295, %v2608_v34  ;;  %v507_v41 = vrot.slane %v503_v26, %v1759_v13  ;;  %v511_v42 = vrot.slane %v503_v26, %v1763_v18  ;;  %v519_v3 = vrot.slane %v503_v26, %v1769_v22 }
  0xd7   :  { %vm2008_vm3 = vcmp.eq.s32.totalorder %v507_v41, 1 }
  0xd8   :  { %v2619_v17 = vsel %vm2008_vm3, 4294967295, %v2618_v17 }
  0xf5   :  { %v1867_v48 = vpop.permute.xlu0 %411 }
  0xf6   :  { %v1869_v49 = vpop.permute.xlu1 %159 }
  0xf9   :  { %v1871_v50 = vpop.permute.xlu0 %537 }
  0xfa   :  { %v1873_v51 = vpop.permute.xlu1 %285 }
  0xfd   :  { %v1875_v52 = vpop.permute.xlu0 %354 }
  0xfe   :  { %v1877_v53 = vpop.permute.xlu1 %228 }
 0x101   :  { %v1879_v54 = vpop.permute.xlu0 %480 }
 0x102   :  { %v1881_v55 = vpop.permute.xlu1 %155 }
 0x105   :  { %v152_v57 = vpop.permute.xlu0 %151 }
 0x106   :  { %v1884_v58 = vpop.permute.xlu1 %281 }
 0x109   :  { %v1890_v59 = vpop.permute.xlu0 %220 }
 0x10a   :  { %v1892_v60 = vpop.permute.xlu1 %277 }
 0x10d   :  { %v1907_v1 = vpop.permute.xlu0 %407 }
 0x10e   :  { %v1909_v4 = vpop.permute.xlu1 %224 }
 0x111   :  { %v1924_v6 = vpop.permute.xlu0 %533 }
 0x112   :  { %v404_v7 = vpop.permute.xlu1 %403 }
 0x115   :  { %v1941_v19 = vpop.permute.xlu0 %529 }
 0x116   :  { %v1943_v21 = vpop.permute.xlu1 %346 }
 0x119   :  { %v1973_v37 = vpop.permute.xlu0 %350 }
 0x11a   :  { %v154_v38 = vpop.permute.xlu1 %153 }
 0x11b   :  { %v162_v43 = vsel %vm2616_vm14, %v152_v57, %v154_v38  ;;  %v163_v44 = vsel %vm2617_vm15, %v154_v38, %v1881_v55  ;;  %v515_v57 = vrot.slane %v503_v26, %v1766_v20  ;;  %vm2622_vm14 = vcmask 900096   ;;  %vm2624_vm15 = vmand %vm1899_vm10, %vm1894_vm8 }
 0x11c   :  { %v170_v56 = vsel %vm1948_vm0, %v162_v43, 0.0  ;;  %v171_v62 = vsel %vm1952_vm1, %v163_v44, 0.0  ;;  %vm2012_vm0 = vcmp.eq.s32.totalorder %v511_v42, 1  ;;  %vm2623_vm5 = vmmov %vm2622_vm14  ;;  %v2025_v29 = vsel %vm2624_vm15, 1, %v1664_v2 }
 0x11d   :  { %v178_v10 = vrot.slane %v170_v56, 4  ;;  %v179_v11 = vrot.slane %v171_v62, 4  ;;  %v2006_v15 = vpop.permute.xlu0 %476  ;;  %v2621_v23 = vsel %vm2012_vm0, 4294967295, %v2620_v23  ;;  %vm2625_vm1 = vmand %vm1747_vm4, %vm1903_vm11  ;;  %vm2043_vm8 = vcmp.eq.s32.totalorder %v259_v47, 1 }
 0x11e   :  { %v406_v16 = vpop.permute.xlu1 %405  ;;  %v2033_v38 = vsel %vm2625_vm1, 1, %v1664_v2  ;;  %vm2047_vm10 = vcmp.eq.s32.totalorder %v515_v57, 1  ;;  %v2630_v43 = vmov 0  ;;  %vm2051_vm4 = vcmp.eq.s32.totalorder %v519_v3, 1 }
 0x11f   :  { %186 = vst [vmem:[#allocation4] sm:$0xf0] %v178_v10  ;;  %187 = vst [vmem:[#allocation4 + $0x8] sm:$0xf0] %v179_v11  ;;  %v414_v25 = vsel %vm2622_vm14, %v404_v7, %v406_v16  ;;  %v415_v26 = vsel %vm2623_vm5, %v406_v16, %v1907_v1  ;;  %vm2039_vm5 = vcmp.eq.s32.totalorder %v255_v45, 1  ;;  %v2631_v43 = vsel %vm2047_vm10, 4294967295, %v2630_v43 }
 0x120   :  { %v422_v7 = vsel %vm1957_vm12, %v414_v25, 0.0  ;;  %v423_v41 = vsel %vm1961_vm13, %v415_v26, 0.0  ;;  %v2627_v63 = vsel %vm2039_vm5, 4294967295, %v2626_v63  ;;  %v2632_v44 = vmov 0 }
 0x121   :  { %v430_v8 = vrot.slane %v422_v7, 4  ;;  %v431_v42 = vrot.slane %v423_v41, 4  ;;  %v2633_v44 = vsel %vm2051_vm4, 4294967295, %v2632_v44  ;;  %vm2055_vm1 = vcmp.eq.s32.totalorder %v263_v12, 1  ;;  %v158_v62 = vpop.permute.xlu0 %157 }
 0x122   :  { %v2634_v56 = vmov 0  ;;  %vm2059_vm14 = vcmp.eq.s32.totalorder %v267_v14, 1  ;;  %v2636_v45 = vmov 0  ;;  %v410_v47 = vpop.permute.xlu1 %409  ;;  %v324_v57 = vrot.slane %v2025_v29, %v1759_v13 }
 0x123   :  { %v2635_v56 = vsel %vm2055_vm1, 4294967295, %v2634_v56  ;;  %v2637_v45 = vsel %vm2059_vm14, 4294967295, %v2636_v45  ;;  %v328_v10 = vrot.slane %v2025_v29, %v1763_v18  ;;  %v198_v3 = vrot.slane %v2033_v38, %v1759_v13  ;;  %438 = vst [vmem:[#allocation4 + $0x40] sm:$0xf0] %v430_v8  ;;  %439 = vst [vmem:[#allocation4 + $0x48] sm:$0xf0] %v431_v42 }
 0x124   :  { %v202_v11 = vrot.slane %v2033_v38, %v1763_v18  ;;  %vm2638_vm15 = vcmask 900096   ;;  %vm2640_vm13 = vcmask 1039360  }
 0x125   :  { %v416_v12 = vsel %vm2638_vm15, %v1907_v1, %v410_v47  ;;  %vm2639_vm12 = vmmov %vm2638_vm15  ;;  %v164_v16 = vsel %vm2640_vm13, %v1881_v55, %v158_v62 }
 0x126   :  { %v417_v14 = vsel %vm2639_vm12, %v410_v47, %v1867_v48  ;;  %vm2641_vm11 = vmmov %vm2640_vm13  ;;  %v424_v26 = vsel %vm1965_vm6, %v416_v12, 0.0  ;;  %v172_v41 = vsel %vm1975_vm9, %v164_v16, 0.0  ;;  %v532_v47 = vpop.permute.xlu1 %531  ;;  %vm2087_vm13 = vcmp.eq.s32.totalorder %v324_v57, 1 }
 0x127   :  { %v165_v25 = vsel %vm2641_vm11, %v158_v62, %v1869_v49  ;;  %v425_v7 = vsel %vm1969_vm7, %v417_v14, 0.0  ;;  %v432_v48 = vrot.slane %v424_v26, 4  ;;  %v180_v55 = vrot.slane %v172_v41, 4  ;;  %v280_v49 = vpop.permute.xlu0 %279 }
 0x128   :  { %v173_v1 = vsel %vm1979_vm2, %v165_v25, 0.0  ;;  %v433_v8 = vrot.slane %v425_v7, 4  ;;  %v2642_v62 = vmov 0  ;;  %vm2091_vm11 = vcmp.eq.s32.totalorder %v328_v10, 1 }
 0x129   :  { %v181_v42 = vrot.slane %v173_v1, 4  ;;  %v2643_v62 = vsel %vm2087_vm13, 4294967295, %v2642_v62  ;;  %v2644_v12 = vmov 0  ;;  %vm2095_vm6 = vcmp.eq.s32.totalorder %v198_v3, 1  ;;  %440 = vst [vmem:[#allocation4 + $0x50] sm:$0xf0] %v432_v48 }
 0x12a   :  { %v2645_v12 = vsel %vm2091_vm11, 4294967295, %v2644_v12  ;;  %vm2099_vm15 = vcmp.eq.s32.totalorder %v202_v11, 1  ;;  %441 = vst [vmem:[#allocation4 + $0x58] sm:$0xf0] %v433_v8  ;;  %188 = vst [vmem:[#allocation4 + $0x10] sm:$0xf0] %v180_v55 }
 0x12b   :  { %189 = vst [vmem:[#allocation4 + $0x18] sm:$0xf0] %v181_v42  ;;  %vm2650_vm12 = vcmask 777216   ;;  %vm2652_vm9 = vcmask 916480   ;;  %v284_v55 = vpop.permute.xlu0 %283  ;;  %v332_v42 = vrot.slane %v2025_v29, %v1766_v20 }
 0x12c   :  { %v540_v57 = vsel %vm2650_vm12, %v1941_v19, %v532_v47  ;;  %vm2651_vm7 = vmmov %vm2650_vm12  ;;  %v288_v3 = vsel %vm2652_vm9, %v1892_v60, %v280_v49  ;;  %v536_v60 = vpop.permute.xlu1 %535 }
 0x12d   :  { %v541_v10 = vsel %vm2651_vm7, %v532_v47, %v1924_v6  ;;  %vm2653_vm2 = vmmov %vm2652_vm9  ;;  %v548_v11 = vsel %vm2008_vm3, %v540_v57, 0.0  ;;  %v296_v7 = vsel %vm2039_vm5, %v288_v3, 0.0  ;;  %v336_v47 = vrot.slane %v2025_v29, %v1769_v22 }
 0x12e   :  { %v289_v25 = vsel %vm2653_vm2, %v280_v49, %v1884_v58  ;;  %v549_v26 = vsel %vm2012_vm0, %v541_v10, 0.0  ;;  %v556_v41 = vrot.slane %v548_v11, 4  ;;  %v304_v48 = vrot.slane %v296_v7, 4  ;;  %vm2654_vm2 = vmmov %vm2651_vm7 }
 0x12f   :  { %v297_v19 = vsel %vm2043_vm8, %v289_v25, 0.0  ;;  %v557_v1 = vrot.slane %v549_v26, 4  ;;  %v206_v49 = vrot.slane %v2033_v38, %v1766_v20  ;;  %v210_v57 = vrot.slane %v2033_v38, %v1769_v22  ;;  %vm2655_vm12 = vmmov %vm2652_vm9 }
 0x130   :  { %v305_v8 = vrot.slane %v297_v19, 4  ;;  %564 = vst [vmem:[#allocation4 + $0x60] sm:$0xf0] %v556_v41  ;;  %312 = vst [vmem:[#allocation4 + $0x20] sm:$0xf0] %v304_v48  ;;  %v542_v10 = vsel %vm2651_vm7, %v1924_v6, %v536_v60  ;;  %v543_v3 = vsel %vm2654_vm2, %v536_v60, %v1871_v50  ;;  %v290_v25 = vsel %vm2652_vm9, %v1884_v58, %v284_v55  ;;  %v223_v19 = vpop.permute.xlu0 %222 }
 0x131   :  { %565 = vst [vmem:[#allocation4 + $0x68] sm:$0xf0] %v557_v1  ;;  %v291_v29 = vsel %vm2655_vm12, %v284_v55, %v1873_v51  ;;  %vm2656_vm3 = vnez %v2583_v9  ;;  %vm2657_vm0 = vnez %v2599_v5  ;;  %v550_v38 = vsel %vm2047_vm10, %v542_v10, 0.0  ;;  %v349_v9 = vpop.permute.xlu1 %348 }
 0x132   :  { %313 = vst [vmem:[#allocation4 + $0x28] sm:$0xf0] %v305_v8  ;;  %vm445_vm5 = vmand %vm2657_vm0, %vm2656_vm3  ;;  %v551_v6 = vsel %vm2051_vm4, %v543_v3, 0.0  ;;  %v298_v50 = vsel %vm2055_vm1, %v290_v25, 0.0  ;;  %v299_v58 = vsel %vm2059_vm14, %v291_v29, 0.0  ;;  %v558_v11 = vrot.slane %v550_v38, 4 }
 0x133   :  { %v559_v26 = vrot.slane %v551_v6, 4  ;;  %v306_v51 = vrot.slane %v298_v50, 4  ;;  %v307_v7 = vrot.slane %v299_v58, 4  ;;  %vm2147_vm7 = vcmp.eq.s32.totalorder %v332_v42, 1 }
 0x134   :  { %v2658_v41 = vmov 0  ;;  %vm2151_vm3 = vcmp.eq.s32.totalorder %v336_v47, 1  ;;  %v2660_v1 = vmov 0  ;;  %v446_v48 = vsel %vm445_vm5, 1, %v1664_v2  ;;  %566 = vst [vmem:[#allocation4 + $0x70] sm:$0xf0] %v558_v11  ;;  %v227_v50 = vpop.permute.xlu0 %226 }
 0x135   :  { %v2659_v41 = vsel %vm2147_vm7, 4294967295, %v2658_v41  ;;  %v2661_v1 = vsel %vm2151_vm3, 4294967295, %v2660_v1  ;;  %567 = vst [vmem:[#allocation4 + $0x78] sm:$0xf0] %v559_v26  ;;  %314 = vst [vmem:[#allocation4 + $0x30] sm:$0xf0] %v306_v51  ;;  %v454_v29 = vrot.slane %v446_v48, %v1763_v18  ;;  %v450_v38 = vrot.slane %v446_v48, %v1759_v13  ;;  %v353_v6 = vpop.permute.xlu1 %352 }
 0x136   :  { %315 = vst [vmem:[#allocation4 + $0x38] sm:$0xf0] %v307_v7  ;;  %vm2662_vm2 = vcmask 908288   ;;  %vm2664_vm12 = vcmask 1031168   ;;  %vm2172_vm5 = vcmp.eq.s32.totalorder %v206_v49, 1  ;;  %v2668_v25 = vmov 0 }
 0x137   :  { %v357_v8 = vsel %vm2662_vm2, %v1943_v21, %v349_v9  ;;  %vm2663_vm9 = vmmov %vm2662_vm2  ;;  %v231_v55 = vsel %vm2664_vm12, %v1890_v59, %v223_v19  ;;  %v2666_v59 = vmov 0  ;;  %vm2565_vm2 = vcmask 785408  }
 0x138   :  { %v358_v60 = vsel %vm2663_vm9, %v349_v9, %v1973_v37  ;;  %vm2665_vm10 = vmmov %vm2664_vm12  ;;  %v365_v47 = vsel %vm2087_vm13, %v357_v8, 0.0  ;;  %v239_v3 = vsel %vm2095_vm6, %v231_v55, 0.0  ;;  %v2667_v59 = vsel %vm2172_vm5, 4294967295, %v2666_v59  ;;  %v473_v9 = vpop.permute.xlu0 %472  ;;  %v627_v55 = vld [vmem:[#allocation4 + $0x8] sm:$0xff] }
 0x139   :  { %v232_v42 = vsel %vm2665_vm10, %v223_v19, %v1909_v4  ;;  %v366_v10 = vsel %vm2091_vm11, %v358_v60, 0.0  ;;  %369 = vst [vmem:[#allocation4 + $0x40] sm:$0xf] %v365_v47  ;;  %243 = vst [vmem:[#allocation4 + $0x20] sm:$0xf] %v239_v3  ;;  %vm2176_vm10 = vcmp.eq.s32.totalorder %v210_v57, 1  ;;  %v458_v58 = vrot.slane %v446_v48, %v1766_v20  ;;  %v475_v7 = vpop.permute.xlu1 %474 }
 0x13a   :  { %v240_v21 = vsel %vm2099_vm15, %v232_v42, 0.0  ;;  %370 = vst [vmem:[#allocation4 + $0x48] sm:$0xf] %v366_v10  ;;  %v2669_v25 = vsel %vm2176_vm10, 4294967295, %v2668_v25  ;;  %v359_v11 = vsel %vm2663_vm9, %v1973_v37, %v353_v6  ;;  %vm2670_vm12 = vmmov %vm2663_vm9  ;;  %vm2671_vm4 = vcmask 1031168   ;;  %v626_v3 = vld [vmem:[#allocation4] sm:$0xff] }
 0x13b   :  { %244 = vst [vmem:[#allocation4 + $0x28] sm:$0xf] %v240_v21  ;;  %v360_v49 = vsel %vm2670_vm12, %v353_v6, %v1875_v52  ;;  %v233_v57 = vsel %vm2671_vm4, %v1909_v4, %v227_v50  ;;  %vm2672_vm13 = vmmov %vm2671_vm4  ;;  %vm2673_vm11 = vnez %v2597_v0  ;;  %v367_v51 = vsel %vm2147_vm7, %v359_v11, 0.0 }
 0x13c   :  { %v234_v26 = vsel %vm2672_vm13, %v227_v50, %v1877_v53  ;;  %vm571_vm1 = vmand %vm2657_vm0, %vm2673_vm11  ;;  %v368_v37 = vsel %vm2151_vm3, %v360_v49, 0.0  ;;  %v241_v52 = vsel %vm2172_vm5, %v233_v57, 0.0  ;;  %371 = vst [vmem:[#allocation4 + $0x50] sm:$0xf] %v367_v51  ;;  %vm2203_vm4 = vcmp.eq.s32.totalorder %v454_v29, 1  ;;  %v629_v49 = vld [vmem:[#allocation4 + $0x18] sm:$0xff]  ;;  %v603_v51 = vpop.permute.xlu0 %602 }
 0x13d   :  { %v242_v4 = vsel %vm2176_vm10, %v234_v26, 0.0  ;;  %372 = vst [vmem:[#allocation4 + $0x58] sm:$0xf] %v368_v37  ;;  %245 = vst [vmem:[#allocation4 + $0x30] sm:$0xf] %v241_v52  ;;  %v2674_v53 = vmov 0  ;;  %v462_v5 = vrot.slane %v446_v48, %v1769_v22  ;;  %v484_v8 = vsel %vm2565_vm2, %v475_v7, %v2006_v15  ;;  %v479_v50 = vpop.permute.xlu1 %478 }
 0x13e   :  { %246 = vst [vmem:[#allocation4 + $0x38] sm:$0xf] %v242_v4  ;;  %v2675_v53 = vsel %vm2203_vm4, 4294967295, %v2674_v53  ;;  %vm2207_vm0 = vcmp.eq.s32.totalorder %v450_v38, 1  ;;  %v2676_v0 = vmov 0  ;;  %v2213_v19 = vsel %vm571_vm1, 1, %v1664_v2 }
 0x13f   :  { %v2677_v0 = vsel %vm2207_vm0, 4294967295, %v2676_v0  ;;  %v483_v60 = vsel %vm2565_vm2, %v473_v9, %v475_v7  ;;  %v492_v42 = vsel %vm2203_vm4, %v484_v8, 0.0  ;;  %vm2222_vm13 = vcmp.eq.s32.totalorder %v458_v58, 1 }
 0x140   :  { %v491_v47 = vsel %vm2207_vm0, %v483_v60, 0.0  ;;  %v2678_v10 = vmov 0  ;;  %v630_v2 = vld [vmem:[#allocation4 + $0x20] sm:$0xff]  ;;  %496 = vst [vmem:[#allocation4 + $0x68] sm:$0xf] %v492_v42  ;;  %vm2226_vm1 = vcmp.eq.s32.totalorder %v462_v5, 1  ;;  %v580_v6 = vrot.slane %v2213_v19, %v1763_v18 }
 0x141   :  { %v2679_v10 = vsel %vm2222_vm13, 4294967295, %v2678_v10  ;;  %495 = vst [vmem:[#allocation4 + $0x60] sm:$0xf] %v491_v47  ;;  %v2680_v21 = vmov 0  ;;  %v1491_v38 = vpack.c.bf16 %v630_v2, %v626_v3  ;;  %v485_v58 = vsel %vm2565_vm2, %v2006_v15, %v479_v50  ;;  %v628_v18 = vld [vmem:[#allocation4 + $0x10] sm:$0xff]  ;;  %v601_v9 = vpop.permute.xlu1 %600  ;;  %v635_v60 = vld [vmem:[#allocation4 + $0x48] sm:$0xff] }
 0x142   :  { %v631_v48 = vld [vmem:[#allocation4 + $0x28] sm:$0xff]  ;;  %v2681_v21 = vsel %vm2226_vm1, 4294967295, %v2680_v21  ;;  %v486_v11 = vsel %vm2565_vm2, %v479_v50, %v1879_v54  ;;  %v493_v57 = vsel %vm2222_vm13, %v485_v58, 0.0  ;;  %vm2567_vm11 = vcmask 769024   ;;  %v634_v47 = vld [vmem:[#allocation4 + $0x40] sm:$0xff] }
 0x143   :  { %v1489_v29 = vpack.c.bf16 %v631_v48, %v627_v55  ;;  %v494_v26 = vsel %vm2226_vm1, %v486_v11, 0.0  ;;  %v584_v15 = vrot.slane %v2213_v19, %v1766_v20  ;;  %497 = vst [vmem:[#allocation4 + $0x70] sm:$0xf] %v493_v57  ;;  %vm2242_vm9 = vcmp.eq.s32.totalorder %v580_v6, 1 }
 0x144   :  { %v632_v52 = vld [vmem:[#allocation4 + $0x30] sm:$0xff]  ;;  %498 = vst [vmem:[#allocation4 + $0x78] sm:$0xf] %v494_v26  ;;  %v2682_v54 = vmov 0  ;;  %v588_v7 = vrot.slane %v2213_v19, %v1769_v22  ;;  %v610_v8 = vsel %vm2567_vm11, %v601_v9, %v603_v51  ;;  %v2684_v20 = vmov 0  ;;  %v637_v11 = vld [vmem:[#allocation4 + $0x58] sm:$0xff] }
 0x145   :  { %1490 = vmatprep.subr.bf16.mxu0 %v1489_v29  ;;  %v633_v37 = vld [vmem:[#allocation4 + $0x38] sm:$0xff]  ;;  %v2683_v54 = vsel %vm2242_vm9, 4294967295, %v2682_v54  ;;  %v1499_v5 = vpack.c.bf16 %v632_v52, %v628_v18  ;;  %v618_v55 = vsel %vm2242_vm9, %v610_v8, 0.0  ;;  %vm2251_vm12 = vcmp.eq.s32.totalorder %v584_v15, 1  ;;  %v605_v6 = vpop.permute.xlu1 %604 }
 0x146   :  { %1492 = vmatpush1.bf16.msra.mxu0 %v1491_v38  ;;  %v1497_v4 = vpack.c.bf16 %v633_v37, %v629_v49  ;;  %v2685_v20 = vsel %vm2251_vm12, 4294967295, %v2684_v20  ;;  %622 = vst [vmem:[#allocation4 + $0x88] sm:$0xf] %v618_v55  ;;  %vm2255_vm2 = vcmp.eq.s32.totalorder %v588_v7, 1  ;;  %v2686_v3 = vmov 0  ;;  %v607_v38 = vpop.permute.xlu0 %606  ;;  %v636_v37 = vld [vmem:[#allocation4 + $0x50] sm:$0xff] }
 0x147   :  { %v639_v42 = vld [vmem:[#allocation4 + $0x68] sm:$0xff]  ;;  %v2687_v3 = vsel %vm2255_vm2, 4294967295, %v2686_v3  ;;  %v576_v29 = vrot.slane %v2213_v19, %v1759_v13  ;;  %v611_v50 = vsel %vm2567_vm11, %v603_v51, %v605_v6  ;;  %v612_v58 = vsel %vm2567_vm11, %v605_v6, %v607_v38 }
 0x148   :  { %1498 = vmatprep.subr.bf16.mxu1 %v1497_v4  ;;  %v638_v48 = vld [vmem:[#allocation4 + $0x60] sm:$0xff]  ;;  %v1493_v22 = vpack.c.bf16 %v639_v42, %v635_v60  ;;  %v619_v49 = vsel %vm2251_vm12, %v611_v50, 0.0  ;;  %v620_v57 = vsel %vm2255_vm2, %v612_v58, 0.0  ;;  %v2688_v13 = vmov 0 }
 0x149   :  { %1500 = vmatpush1.bf16.msra.mxu1 %v1499_v5  ;;  %v1495_v2 = vpack.c.bf16 %v638_v48, %v634_v47  ;;  %623 = vst [vmem:[#allocation4 + $0x90] sm:$0xf] %v619_v49  ;;  %624 = vst [vmem:[#allocation4 + $0x98] sm:$0xf] %v620_v57  ;;  %vm2267_vm9 = vcmp.eq.s32.totalorder %v576_v29, 1  ;;  %v599_v52 = vpop.permute.xlu1 %598  ;;  %vm656_vm11 = vcmask 1043456   ;;  %vm2699_vm1 = vnez %v2613_v39 }
 0x14a   :  { %1494 = vmatprep.subr.bf16.mxu0 %v1493_v22  ;;  %v640_v18 = vld [vmem:[#allocation4 + $0x70] sm:$0xff]  ;;  %v2689_v13 = vsel %vm2267_vm9, 4294967295, %v2688_v13  ;;  %vm2690_vm13 = vcmask 769024   ;;  %v625_v60 = vld [vmem:[%s2528_s2] sm:$0xff]  ;;  %vm652_vm12 = vcmask 293888   ;;  %vm2704_vm5 = vnez %v2585_v24 }
 0x14b   :  { %1496 = vmatpush1.bf16.msra.mxu0 %v1495_v2  ;;  %v641_v26 = vld [vmem:[#allocation4 + $0x78] sm:$0xff]  ;;  %v1503_v51 = vpack.c.bf16 %v640_v18, %v636_v37  ;;  %v609_v15 = vsel %vm2690_vm13, %v599_v52, %v601_v9  ;;  %vm835_vm13 = vcmask 1047688   ;;  %vm2705_vm14 = vnez %v2601_v27 }
 0x14c   :  { %v1501_v19 = vpack.c.bf16 %v641_v26, %v637_v11  ;;  %v617_v4 = vsel %vm2267_vm9, %v609_v15, 0.0  ;;  %vm1509_vm10 = vmpackc.low %vm2705_vm14, %vm2704_vm5 }
 0x14d   :  { %v643_v5 = vld [vmem:[#allocation4 + $0x88] sm:$0xf]  ;;  %621 = vst [vmem:[#allocation4 + $0x80] sm:$0xf] %v617_v4 }
 0x14e   :  { %1502 = vmatprep.subr.bf16.mxu1 %v1501_v19  ;;  %1439 = vmatprep.subr.msk.mxu0 %vm656_vm11, %v643_v5  ;;  %v650_v55 = vpop.permute.xlu0 %649 }
 0x14f   :  { %1504 = vmatpush1.bf16.msra.mxu1 %v1503_v51 }
 0x150   :  { %v645_v7 = vld [vmem:[#allocation4 + $0x98] sm:$0xf]  ;;  %v644_v8 = vld [vmem:[#allocation4 + $0x90] sm:$0xf] }
 0x151   :  { %1442 = vmatprep.subr.msk.mxu1 %vm656_vm11, %v645_v7 }
 0x153   :  { %1443 = vmatpush1.msk.msra.mxu1 %vm656_vm11, %v644_v8  ;;  %v1179_v8 = vld [vmem:[%s2531_s5] sm:$0xff] }
 0x154   :  { %1444 = vmatmul.mubr.msk.f32.vlgmr.msra.gmra.mrb[0].mxu1 %vm652_vm12, %v625_v60  ;;  %v642_v9 = vld [vmem:[#allocation4 + $0x80] sm:$0xf] }
 0x155   :  { %1339 = vmatprep.mubr.f32.mxu1 %v1673_v46  ;;  %1440 = vmatpush1.msk.msra.mxu0 %vm656_vm11, %v642_v9  ;;  %vm2691_vm11 = vcmask 138240  }
 0x156   :  { %1441 = vmatmul.mubr.msk.f32.vlgmr.msra.gmra.mrb[0].mxu0 %vm652_vm12, %v625_v60  ;;  %vm2692_vm12 = vmmov %vm2691_vm11  ;;  %v1180_v60 = vld [vmem:[%s2531_s5 + $0x8] sm:$0xff]  ;;  %s1427_s5 = sshll.u32 %s1674_s29, 4  ;;  %s1428_s5 = int_to_ptr.vmem [resolvable:$true] %s1427_s5 }
 0x157   :  { %1262 = vmatprep.mubr.f32.mxu0 %v1673_v46  ;;  %vm2693_vm2 = vmmov %vm2691_vm11  ;;  %s1639_s30 = scalar_lea.vmem %s1428_s5, 32  ;;  %p1644_p1 = scmp.lt.s32.totalorder %s1428_s5, %s1428_s5 }
 0x158   :  { %vm2694_vm9 = vmmov %vm2693_vm2  ;;  %p1640_p0 = scmp.ne.s32.totalorder %s1428_s5, %s1639_s30  ;;  %p1645_p2 = scmp.lt.s32.totalorder %s1639_s30, %s1639_s30 }
 0x15a   :  { %p1646_p3 = por %p1645_p2, %p1644_p1 }
 0x15c   :  { %p1647_p4 = pnand %p1646_p3, %p1640_p0 }
 0x227   :  { %v806_v42 = vpop.f32.mrb[0].mxu1 }
 0x228   :  { %v808_v47 = vpop.f32.mrb[1].mxu1  ;;  %v807_v48 = vadd.f32 %v806_v42, %v650_v55 }
 0x229   :  { %v735_v22 = vpop.f32.mrb[0].mxu0  ;;  %v809_v58 = vadd.f32 %v808_v47, %v650_v55 }
 0x22a   :  { %v813_v2 = vmax.f32 %v807_v48, 0.0  ;;  %v736_v29 = vadd.f32 %v735_v22, %v650_v55  ;;  %v737_v38 = vpop.f32.mrb[1].mxu0 }
 0x22b   :  { %v738_v50 = vadd.f32 %v737_v38, %v650_v55  ;;  %v814_v49 = vmax.f32 %v809_v58, 0.0 }
 0x22c   :  { %823 = vrot.lane.b32.xlu0 %v813_v2, %s1663_s11  ;;  %v811_v6 = vmax.f32 %v736_v29, 0.0 }
 0x22d   :  { %v812_v11 = vmax.f32 %v738_v50, 0.0 }
 0x22e   :  { %819 = vrot.lane.b32.xlu1 %v811_v6, %s1663_s11 }
 0x232   :  { %821 = vrot.lane.b32.xlu1 %v812_v11, %s1663_s11 }
 0x236   :  { %825 = vrot.lane.b32.xlu1 %v814_v49, %s1663_s11 }
 0x29e   :  { %v824_v26 = vpop.permute.xlu0 %823 }
 0x2a0   :  { %v820_v57 = vpop.permute.xlu1 %819 }
 0x2a1   :  { %836 = vst.msk [vmem:[#allocation3] sm:$0xff] %vm835_vm13, %v820_v57  ;;  %vm2697_vm13 = vnez %v2615_v40 }
 0x2a4   :  { %v822_v37 = vpop.permute.xlu1 %821 }
 0x2a5   :  { %v2288_v18 = vsel %vm2691_vm11, %v820_v57, %v822_v37  ;;  %v2291_v19 = vsel %vm2692_vm12, %v822_v37, %v824_v26  ;;  %vm2698_vm12 = vnez %v2589_v33 }
 0x2a6   :  { %v1566_v7 = vpack.i.bf16 %v2291_v19, %v2288_v18  ;;  %vm1533_vm0 = vmpackc.low %vm2699_vm1, %vm2698_vm12 }
 0x2a8   :  { %v826_v51 = vpop.permute.xlu1 %825  ;;  %v2293_v52 = vld [vmem:[#allocation3] sm:$0xff] }
 0x2a9   :  { %v829_v15 = vsel %vm2693_vm2, %v824_v26, %v826_v51  ;;  %840 = vst.msk [vmem:[#allocation3 + $0x20] sm:$0xff] %vm2694_vm9, %v826_v51  ;;  %899 = vrot.lane.b32.xlu1 %v2293_v52, %s1670_s21  ;;  %863 = vrot.lane.b32.xlu0 %v2293_v52, %s1666_s1  ;;  %vm2695_vm2 = vcmask 1039360   ;;  %vm2696_vm9 = vnez %v2591_v36 }
 0x2aa   :  { %vm1530_vm11 = vmpackc.low %vm2697_vm13, %vm2696_vm9  ;;  %vm2702_vm9 = vnez %v2587_v30  ;;  %vm2703_vm13 = vnez %v2603_v28 }
 0x2ab   :  { %vm2700_vm4 = vmmov %vm2695_vm2 }
 0x2ac   :  { %vm2701_vm7 = vmmov %vm2695_vm2 }
 0x2ad   :  { %971 = vrot.lane.b32.xlu1 %v2293_v52, %s1669_s20  ;;  %935 = vrot.lane.b32.xlu0 %v2293_v52, %s1668_s19  ;;  %vm1506_vm3 = vmpackc.low %vm2703_vm13, %vm2702_vm9  ;;  %vm2717_vm9 = vnez %v2667_v59  ;;  %vm2718_vm13 = vnez %v2635_v56 }
 0x2b0   :  { %v857_v4 = vld [vmem:[#allocation3 + $0x20] sm:$0xff] }
 0x2b1   :  { %1043 = vrot.lane.b32.xlu1 %v2293_v52, %s1671_s22  ;;  %1007 = vrot.lane.b32.xlu0 %v2293_v52, %s1665_s0  ;;  %v1571_v5 = vpack.i.bf16 %v857_v4, %v829_v15 }
 0x2b5   :  { %1079 = vrot.lane.b32.xlu0 %v2293_v52, %s1667_s18  ;;  %1572 = vrot.lane.b32.xlu1 %v1571_v5, %s1666_s1 }
 0x2b9   :  { %1567 = vrot.lane.b32.xlu0 %v1566_v7, %s1666_s1  ;;  %1577 = vrot.lane.b32.xlu1 %v1566_v7, %s1670_s21 }
 0x2bd   :  { %1582 = vrot.lane.b32.xlu0 %v1571_v5, %s1670_s21  ;;  %1587 = vrot.lane.b32.xlu1 %v1566_v7, %s1668_s19 }
 0x2c1   :  { %1592 = vrot.lane.b32.xlu0 %v1571_v5, %s1668_s19  ;;  %1597 = vrot.lane.b32.xlu1 %v1566_v7, %s1669_s20 }
 0x2c5   :  { %1602 = vrot.lane.b32.xlu0 %v1571_v5, %s1669_s20  ;;  %1607 = vrot.lane.b32.xlu1 %v1566_v7, %s1665_s0 }
 0x2c9   :  { %1612 = vrot.lane.b32.xlu0 %v1571_v5, %s1665_s0  ;;  %1617 = vrot.lane.b32.xlu1 %v1566_v7, %s1671_s22 }
 0x2cd   :  { %1622 = vrot.lane.b32.xlu0 %v1571_v5, %s1671_s22  ;;  %1627 = vrot.lane.b32.xlu1 %v1566_v7, %s1667_s18 }
 0x2d1   :  { %1632 = vrot.lane.b32.xlu0 %v1571_v5, %s1667_s18  ;;  %1117 = vrot.lane.b32.xlu1 %v2288_v18, %s1672_s23 }
 0x2d5   :  { %1119 = vrot.lane.b32.xlu0 %v2291_v19, %s1672_s23  ;;  %1121 = vrot.lane.b32.xlu1 %v829_v15, %s1672_s23 }
 0x2d9   :  { %1123 = vrot.lane.b32.xlu0 %v857_v4, %s1672_s23  ;;  %1115 = vrot.lane.b32.xlu1 %v2293_v52, %s1672_s23 }
 0x2dd   :  { %1183 = vperm.xlu0 %1565, %v1179_v8   ;;  %1188 = vperm.xlu1 %1636, %v1180_v60  }
 0x31b   :  { %v864_v9 = vpop.permute.xlu0 %863  ;;  %v900_v55 = vpop.permute.xlu1 %899 }
 0x31f   :  { %v936_v42 = vpop.permute.xlu0 %935  ;;  %v2341_v47 = vpop.permute.xlu1 %971 }
 0x323   :  { %v2343_v48 = vpop.permute.xlu0 %1007  ;;  %v2345_v22 = vpop.permute.xlu1 %1043 }
 0x327   :  { %v2347_v2 = vpop.permute.xlu0 %1079  ;;  %v1573_v29 = vpop.permute.xlu1 %1572 }
 0x328   :  { %v1575_v38 = vunpack.i.h.bf16 %v1573_v29  ;;  %v1574_v6 = vunpack.i.l.bf16 %v1573_v29 }
 0x32a   :  { %v876_v50 = vsel %vm2695_vm2, %v1574_v6, %v1575_v38 }
 0x32b   :  { %v1529_v58 = vpack.c.bf16 %v876_v50, %v829_v15  ;;  %v1568_v11 = vpop.permute.xlu0 %1567  ;;  %v1578_v49 = vpop.permute.xlu1 %1577 }
 0x32c   :  { %v1570_v57 = vunpack.i.h.bf16 %v1568_v11  ;;  %v1569_v26 = vunpack.i.l.bf16 %v1568_v11  ;;  %v1580_v37 = vunpack.i.h.bf16 %v1578_v49  ;;  %v1579_v51 = vunpack.i.l.bf16 %v1578_v49 }
 0x32d   :  { %1531 = vmatprep.subr.msk.bf16.mxu1 %vm1530_vm11, %v1529_v58  ;;  %vm2708_vm11 = vcmask 916480  }
 0x32e   :  { %v873_v4 = vsel %vm2700_vm4, %v864_v9, %v1569_v26  ;;  %v874_v36 = vsel %vm2695_vm2, %v1569_v26, %v1570_v57  ;;  %v875_v40 = vsel %vm2701_vm7, %v1570_v57, %v1574_v6  ;;  %vm2706_vm7 = vcmask 1031168   ;;  %vm2709_vm2 = vmmov %vm2708_vm11 }
 0x32f   :  { %v1505_v15 = vpack.c.bf16 %v874_v36, %v2288_v18  ;;  %v1508_v5 = vpack.c.bf16 %v873_v4, %v2293_v52  ;;  %v1532_v7 = vpack.c.bf16 %v875_v40, %v2291_v19  ;;  %v1583_v8 = vpop.permute.xlu0 %1582  ;;  %v1588_v60 = vpop.permute.xlu1 %1587  ;;  %v909_v30 = vsel %vm2706_vm7, %v900_v55, %v1579_v51  ;;  %vm2707_vm4 = vmmov %vm2706_vm7 }
 0x330   :  { %v1590_v9 = vunpack.i.h.bf16 %v1588_v60  ;;  %v1589_v29 = vunpack.i.l.bf16 %v1588_v60  ;;  %v910_v28 = vsel %vm2707_vm4, %v1579_v51, %v1580_v37  ;;  %v1585_v18 = vunpack.i.h.bf16 %v1583_v8  ;;  %vm2711_vm14 = vmmov %vm2707_vm4 }
 0x331   :  { %1507 = vmatprep.subr.msk.bf16.mxu0 %vm1506_vm3, %v1505_v15  ;;  %1534 = vmatpush1.bf16.msk.msra.mxu1 %vm1533_vm0, %v1532_v7  ;;  %v1584_v38 = vunpack.i.l.bf16 %v1583_v8  ;;  %vm1512_vm3 = vmpackc.low %vm2043_vm8, %vm2099_vm15  ;;  %vm2710_vm0 = vnez %v2627_v63  ;;  %vm2716_vm15 = vnez %v2637_v45 }
 0x332   :  { %v945_v52 = vsel %vm2708_vm11, %v936_v42, %v1589_v29  ;;  %v946_v19 = vsel %vm2709_vm2, %v1589_v29, %v1590_v9  ;;  %1510 = vmatpush1.bf16.msk.msra.mxu0 %vm1509_vm10, %v1508_v5  ;;  %vm1515_vm1 = vmpackc.low %vm2710_vm0, %vm2095_vm6  ;;  %vm2715_vm6 = vnez %v2669_v25  ;;  %vm2723_vm0 = vnez %v2645_v12 }
 0x333   :  { %v1511_v33 = vpack.c.bf16 %v946_v19, %v910_v28  ;;  %v1514_v39 = vpack.c.bf16 %v945_v52, %v909_v30  ;;  %v1593_v55 = vpop.permute.xlu0 %1592  ;;  %v1598_v42 = vpop.permute.xlu1 %1597  ;;  %v911_v58 = vsel %vm2711_vm14, %v1580_v37, %v1584_v38  ;;  %vm2712_vm5 = vmmov %vm2707_vm4  ;;  %vm2719_vm4 = vcmask 908288  }
 0x334   :  { %v1595_v6 = vunpack.i.h.bf16 %v1593_v55  ;;  %v1594_v27 = vunpack.i.l.bf16 %v1593_v55  ;;  %v1600_v50 = vunpack.i.h.bf16 %v1598_v42  ;;  %v1599_v24 = vunpack.i.l.bf16 %v1598_v42  ;;  %vm2713_vm10 = vmmov %vm2709_vm2 }
 0x335   :  { %1513 = vmatprep.subr.msk.bf16.mxu0 %vm1512_vm3, %v1511_v33  ;;  %v912_v16 = vsel %vm2712_vm5, %v1584_v38, %v1585_v18  ;;  %vm2714_vm8 = vmmov %vm2709_vm2  ;;  %vm2721_vm2 = vcmask 900096   ;;  %vm2725_vm5 = vnez %v2643_v62 }
 0x336   :  { %v947_v61 = vsel %vm2713_vm10, %v1590_v9, %v1594_v27  ;;  %v948_v14 = vsel %vm2714_vm8, %v1594_v27, %v1595_v6  ;;  %1516 = vmatpush1.bf16.msk.msra.mxu0 %vm1515_vm1, %v1514_v39  ;;  %vm1536_vm12 = vmpackc.low %vm2716_vm15, %vm2715_vm6  ;;  %v981_v51 = vsel %vm2719_vm4, %v2341_v47, %v1599_v24  ;;  %vm2724_vm1 = vnez %v2607_v32 }
 0x337   :  { %vm1539_vm7 = vmpackc.low %vm2718_vm13, %vm2717_vm9  ;;  %v1535_v63 = vpack.c.bf16 %v948_v14, %v912_v16  ;;  %v1538_v11 = vpack.c.bf16 %v947_v61, %v911_v58  ;;  %v1603_v49 = vpop.permute.xlu0 %1602  ;;  %v1608_v57 = vpop.permute.xlu1 %1607  ;;  %vm2726_vm10 = vnez %v2605_v31  ;;  %vm2731_vm13 = vnez %v2661_v1 }
 0x338   :  { %v1610_v26 = vunpack.i.h.bf16 %v1608_v57  ;;  %v1609_v37 = vunpack.i.l.bf16 %v1608_v57  ;;  %vm2720_vm11 = vmmov %vm2719_vm4  ;;  %v1605_v25 = vunpack.i.h.bf16 %v1603_v49  ;;  %v1604_v45 = vunpack.i.l.bf16 %v1603_v49 }
 0x339   :  { %v982_v4 = vsel %vm2720_vm11, %v1599_v24, %v1600_v50  ;;  %1537 = vmatprep.subr.msk.bf16.mxu1 %vm1536_vm12, %v1535_v63  ;;  %vm2722_vm3 = vmmov %vm2721_vm2  ;;  %vm2733_vm11 = vnez %v2659_v41 }
 0x33a   :  { %v1017_v59 = vsel %vm2721_vm2, %v2343_v48, %v1609_v37  ;;  %v1018_v56 = vsel %vm2722_vm3, %v1609_v37, %v1610_v26  ;;  %1540 = vmatpush1.bf16.msk.msra.mxu1 %vm1539_vm7, %v1538_v11  ;;  %vm1518_vm14 = vmpackc.low %vm2724_vm1, %vm2723_vm0  ;;  %vm2732_vm7 = vnez %v2611_v35  ;;  %vm2735_vm0 = vcmask 785408  }
 0x33b   :  { %vm1521_vm8 = vmpackc.low %vm2726_vm10, %vm2725_vm5  ;;  %v1517_v47 = vpack.c.bf16 %v1018_v56, %v982_v4  ;;  %v1520_v36 = vpack.c.bf16 %v1017_v59, %v981_v51  ;;  %v1613_v40 = vpop.permute.xlu0 %1612  ;;  %v1618_v15 = vpop.permute.xlu1 %1617  ;;  %vm2739_vm10 = vnez %v2675_v53 }
 0x33c   :  { %v1615_v5 = vunpack.i.h.bf16 %v1613_v40  ;;  %v1614_v7 = vunpack.i.l.bf16 %v1613_v40  ;;  %v1620_v48 = vunpack.i.h.bf16 %v1618_v15  ;;  %v1619_v8 = vunpack.i.l.bf16 %v1618_v15  ;;  %vm2727_vm6 = vmmov %vm2719_vm4 }
 0x33d   :  { %1519 = vmatprep.subr.msk.bf16.mxu0 %vm1518_vm14, %v1517_v47  ;;  %v983_v60 = vsel %vm2727_vm6, %v1600_v50, %v1604_v45  ;;  %vm2728_vm15 = vmmov %vm2719_vm4  ;;  %vm2737_vm14 = vcmask 777216  }
 0x33e   :  { %v984_v12 = vsel %vm2728_vm15, %v1604_v45, %v1605_v25  ;;  %vm2729_vm12 = vmmov %vm2721_vm2  ;;  %1522 = vmatpush1.bf16.msk.msra.mxu0 %vm1521_vm8, %v1520_v36  ;;  %v1053_v38 = vsel %vm2735_vm0, %v2345_v22, %v1619_v8  ;;  %vm2740_vm8 = vnez %v2621_v23  ;;  %vm2741_vm15 = vnez %v2677_v0 }
 0x33f   :  { %v1019_v32 = vsel %vm2729_vm12, %v1610_v26, %v1614_v7  ;;  %vm2730_vm9 = vmmov %vm2721_vm2  ;;  %vm2734_vm2 = vnez %v2609_v34  ;;  %v1623_v29 = vpop.permute.xlu0 %1622  ;;  %v1628_v30 = vpop.permute.xlu1 %1627  ;;  %vm2742_vm12 = vnez %v2619_v17 }
 0x340   :  { %v1020_v62 = vsel %vm2730_vm9, %v1614_v7, %v1615_v5  ;;  %vm1542_vm4 = vmpackc.low %vm2732_vm7, %vm2731_vm13  ;;  %v1544_v9 = vpack.c.bf16 %v1019_v32, %v983_v60  ;;  %v1630_v28 = vunpack.i.h.bf16 %v1628_v30  ;;  %v1629_v18 = vunpack.i.l.bf16 %v1628_v30  ;;  %v1378_v30 = vld [vmem:[%s2532_s6 + $0x8] sm:$0xff] }
 0x341   :  { %vm1545_vm3 = vmpackc.low %vm2734_vm2, %vm2733_vm11  ;;  %v1541_v31 = vpack.c.bf16 %v1020_v62, %v984_v12  ;;  %v1625_v1 = vunpack.i.h.bf16 %v1623_v29  ;;  %v1624_v35 = vunpack.i.l.bf16 %v1623_v29  ;;  %vm2747_vm2 = vnez %v2681_v21  ;;  %v1377_v29 = vld [vmem:[%s2532_s6] sm:$0xff] }
 0x342   :  { %vm2736_vm1 = vmmov %vm2735_vm0  ;;  %v1089_v41 = vsel %vm2737_vm14, %v2347_v2, %v1629_v18 }
 0x343   :  { %v1054_v52 = vsel %vm2736_vm1, %v1619_v8, %v1620_v48  ;;  %1543 = vmatprep.subr.msk.bf16.mxu1 %vm1542_vm4, %v1541_v31  ;;  %vm2738_vm5 = vmmov %vm2737_vm14  ;;  %v1526_v19 = vpack.c.bf16 %v1089_v41, %v1053_v38  ;;  %v1633_v33 = vpop.permute.xlu0 %1632  ;;  %v1118_v39 = vpop.permute.xlu1 %1117  ;;  %vm2749_vm1 = vnez %v2679_v10  ;;  %vm2750_vm14 = vnez %v2631_v43 }
 0x344   :  { %v1090_v34 = vsel %vm2738_vm5, %v1629_v18, %v1630_v28  ;;  %1546 = vmatpush1.bf16.msk.msra.mxu1 %vm1545_vm3, %v1544_v9  ;;  %vm1524_vm6 = vmpackc.low %vm2740_vm8, %vm2739_vm10  ;;  %v1635_v55 = vunpack.i.h.bf16 %v1633_v33  ;;  %v1634_v42 = vunpack.i.l.bf16 %v1633_v33  ;;  %vm2748_vm3 = vnez %v2633_v44  ;;  %v1141_v44 = vld [vmem:[%s2530_s4] sm:$0xff] }
 0x345   :  { %vm1527_vm9 = vmpackc.low %vm2742_vm12, %vm2741_vm15  ;;  %v1523_v22 = vpack.c.bf16 %v1090_v34, %v1054_v52  ;;  %vm2751_vm10 = vcmask 769024   ;;  %vm2752_vm8 = vnez %v2683_v54  ;;  %v1142_v54 = vld [vmem:[%s2530_s4 + $0x8] sm:$0xff] }
 0x346   :  { %vm2743_vm13 = vmmov %vm2735_vm0 }
 0x347   :  { %1525 = vmatprep.subr.msk.bf16.mxu0 %vm1524_vm6, %v1523_v22  ;;  %v1055_v2 = vsel %vm2743_vm13, %v1620_v48, %v1624_v35  ;;  %vm2744_vm7 = vmmov %vm2735_vm0  ;;  %v1120_v27 = vpop.permute.xlu0 %1119  ;;  %v1122_v50 = vpop.permute.xlu1 %1121  ;;  %vm1191_vm6 = vcmask 588800   ;;  %vm2756_vm13 = vnez %v2689_v13 }
 0x348   :  { %v1056_v6 = vsel %vm2744_vm7, %v1624_v35, %v1625_v1  ;;  %vm2745_vm4 = vmmov %vm2738_vm5  ;;  %1528 = vmatpush1.bf16.msk.msra.mxu0 %vm1527_vm9, %v1526_v19  ;;  %v1126_v24 = vsel %vm2751_vm10, %v1118_v39, %v1120_v27  ;;  %vm2757_vm7 = vnez %v2687_v3 }
 0x349   :  { %v1091_v53 = vsel %vm2745_vm4, %v1630_v28, %v1634_v42  ;;  %vm2746_vm11 = vmmov %vm2745_vm4  ;;  %1469 = vmatprep.subr.msk.mxu0 %vm2752_vm8, %v1126_v24  ;;  %vm2758_vm4 = vnez %v2685_v20 }
 0x34a   :  { %v1092_v23 = vsel %vm2746_vm11, %v1634_v42, %v1635_v55  ;;  %vm1548_vm0 = vmpackc.low %vm2748_vm3, %vm2747_vm2  ;;  %v1550_v0 = vpack.c.bf16 %v1091_v53, %v1055_v2  ;;  %vm1381_vm11 = vcmask 80896   ;;  %vm1393_vm2 = vcmask 73728  }
 0x34b   :  { %vm1551_vm5 = vmpackc.low %vm2750_vm14, %vm2749_vm1  ;;  %v1547_v17 = vpack.c.bf16 %v1092_v23, %v1056_v6  ;;  %v1124_v21 = vpop.permute.xlu0 %1123  ;;  %v1116_v58 = vpop.permute.xlu1 %1115 }
 0x34c   :  { %vm2753_vm15 = vmmov %vm2751_vm10 }
 0x34d   :  { %1549 = vmatprep.subr.msk.bf16.mxu1 %vm1548_vm0, %v1547_v17  ;;  %v1128_v43 = vsel %vm2753_vm15, %v1122_v50, %v1124_v21  ;;  %vm2754_vm12 = vmmov %vm2751_vm10 }
 0x34e   :  { %1552 = vmatpush1.bf16.msk.msra.mxu1 %vm1551_vm5, %v1550_v0  ;;  %v1125_v10 = vsel %vm2754_vm12, %v1116_v58, %v1118_v39  ;;  %vm2755_vm9 = vmmov %vm2751_vm10  ;;  %v1391_v58 = vld [vmem:[%s2533_s7] sm:$0x1] }
 0x34f   :  { %v1127_v16 = vsel %vm2755_vm9, %v1120_v27, %v1122_v50  ;;  %1470 = vmatpush1.msk.msra.mxu0 %vm2756_vm13, %v1125_v10  ;;  %1487 = vmatprep.subr.msk.mxu1 %vm2757_vm7, %v1128_v43 }
 0x350   :  { %1445 = vmatmul.mubr.msk.f32.vlgmr.msra.gmra.mrb[2].mxu0 %vm1191_vm6, %v1141_v44 }
 0x351   :  { %1268 = vmatprep.mubr.f32.mxu0 %v1673_v46 }
 0x352   :  { %1488 = vmatpush1.msk.msra.mxu1 %vm2758_vm4, %v1127_v16 }
 0x353   :  { %1447 = vmatmul.mubr.msk.f32.vlgmr.msra.gmra.mrb[2].mxu1 %vm1191_vm6, %v1141_v44 }
 0x354   :  { %1345 = vmatprep.mubr.f32.mxu1 %v1673_v46  ;;  %1446 = vmatmul.mubr.msk.f32.gmra.mrb[4].mxu0 %vm1191_vm6, %v1142_v54 }
 0x357   :  { %1448 = vmatmul.mubr.msk.f32.gmra.mrb[4].mxu1 %vm1191_vm6, %v1142_v54  ;;  %v1416_v54 = vld [vmem:[%s2533_s7] sm:$0x1] }
 0x35c   :  { %v1184_v13 = vpop.permute.xlu0 %1183  ;;  %v1189_v57 = vpop.permute.xlu1 %1188 }
 0x423   :  { %v1264_v61 = vpop.f32.mrb[2].mxu0 }
 0x424   :  { %v1265_v14 = vadd.f32 %v1264_v61, %v1184_v13  ;;  %v1266_v3 = vpop.f32.mrb[3].mxu0 }
 0x425   :  { %v1267_v11 = vadd.f32 %v1266_v3, %v1184_v13 }
 0x426   :  { %v1341_v63 = vpop.f32.mrb[2].mxu1  ;;  %1352 = vst [vmem:[%s2534_s8] sm:$0xff] %v1265_v14  ;;  %v1361_v26 = vmax.f32 %v1265_v14, 0.0 }
 0x427   :  { %v1342_v49 = vadd.f32 %v1341_v63, %v1184_v13  ;;  %v1343_v20 = vpop.f32.mrb[3].mxu1  ;;  %1353 = vst [vmem:[%s2534_s8 + $0x8] sm:$0xff] %v1267_v11  ;;  %v1362_v46 = vmax.f32 %v1267_v11, 0.0  ;;  %v1270_v4 = vpop.f32.mrb[4].mxu0 }
 0x428   :  { %v1344_v37 = vadd.f32 %v1343_v20, %v1184_v13  ;;  %v1272_v45 = vpop.f32.mrb[5].mxu0  ;;  %v1271_v56 = vadd.f32 %v1270_v4, %v1189_v57 }
 0x429   :  { %1449 = vst [vmem:[%s2534_s8 + $0x20] sm:$0xff] %v1342_v49  ;;  %v1363_v51 = vmax.f32 %v1342_v49, 0.0  ;;  %v1273_v47 = vadd.f32 %v1272_v45, %v1189_v57  ;;  %v1369_v40 = vadd.f32 %v1362_v46, %v1361_v26 }
 0x42a   :  { %1450 = vst [vmem:[%s2534_s8 + $0x28] sm:$0xff] %v1344_v37  ;;  %v1364_v25 = vmax.f32 %v1344_v37, 0.0  ;;  %v1347_v59 = vpop.f32.mrb[4].mxu1  ;;  %v1365_v7 = vmax.f32 %v1271_v56, 0.0  ;;  %1354 = vst [vmem:[%s2534_s8 + $0x10] sm:$0xff] %v1271_v56 }
 0x42b   :  { %v1348_v36 = vadd.f32 %v1347_v59, %v1189_v57  ;;  %v1349_v15 = vpop.f32.mrb[5].mxu1  ;;  %1355 = vst [vmem:[%s2534_s8 + $0x18] sm:$0xff] %v1273_v47  ;;  %v1366_v8 = vmax.f32 %v1273_v47, 0.0  ;;  %1370 = vadd.xlane.f32.xlu0 %v1369_v40 }
 0x42c   :  { %v1350_v5 = vadd.f32 %v1349_v15, %v1189_v57  ;;  %v1395_v48 = vadd.f32 %v1364_v25, %v1363_v51 }
 0x42d   :  { %1451 = vst [vmem:[%s2534_s8 + $0x30] sm:$0xff] %v1348_v36  ;;  %v1367_v60 = vmax.f32 %v1348_v36, 0.0  ;;  %v1372_v32 = vadd.f32 %v1366_v8, %v1365_v7 }
 0x42e   :  { %1452 = vst [vmem:[%s2534_s8 + $0x38] sm:$0xff] %v1350_v5  ;;  %v1368_v12 = vmax.f32 %v1350_v5, 0.0 }
 0x42f   :  { %1373 = vadd.xlane.f32.xlu1 %v1372_v32  ;;  %1396 = vadd.xlane.f32.xlu0 %v1395_v48 }
 0x430   :  { %v1398_v62 = vadd.f32 %v1368_v12, %v1367_v60 }
 0x433   :  { %1399 = vadd.xlane.f32.xlu0 %v1398_v62 }
 0x4b8   :  { %v1371_v31 = vpop.xlane.xlu0 %1370 }
 0x4b9   :  { %v1375_v9 = vmul.f32 0.00390625, %v1371_v31 }
 0x4bb   :  { %v1379_v38 = vmul.f32 %v1377_v29, %v1375_v9 }
 0x4bc   :  { %v1374_v28 = vpop.xlane.xlu1 %1373  ;;  %v1397_v18 = vpop.xlane.xlu0 %1396 }
 0x4bd   :  { %v1376_v52 = vmul.f32 0.00390625, %v1374_v28  ;;  %v1401_v1 = vmul.f32 0.00390625, %v1397_v18  ;;  %v1382_v34 = vsel %vm1381_vm11, %v1379_v38, 0.0 }
 0x4bf   :  { %v1380_v35 = vmul.f32 %v1378_v30, %v1376_v52  ;;  %v1405_v19 = vmul.f32 %v1401_v1, %v1377_v29 }
 0x4c0   :  { %v1400_v41 = vpop.xlane.xlu0 %1399 }
 0x4c1   :  { %v1383_v22 = vsel %vm1381_vm11, %v1380_v35, 0.0  ;;  %v1402_v33 = vmul.f32 0.00390625, %v1400_v41  ;;  %v1407_v2 = vsel %vm1381_vm11, %v1405_v19, 0.0 }
 0x4c2   :  { %v1384_v39 = vadd.f32 %v1383_v22, %v1382_v34 }
 0x4c3   :  { %v1406_v55 = vmul.f32 %v1402_v33, %v1378_v30 }
 0x4c4   :  { %v1385_v42 = vrot.slane %v1384_v39, 4 }
 0x4c5   :  { %v1408_v6 = vsel %vm1381_vm11, %v1406_v55, 0.0 }
 0x4c6   :  { %v1386_v53 = vadd.f32 %v1385_v42, %v1384_v39  ;;  %v1409_v23 = vadd.f32 %v1408_v6, %v1407_v2 }
 0x4c8   :  { %v1387_v17 = vrot.slane %v1386_v53, 2  ;;  %v1410_v0 = vrot.slane %v1409_v23, 4 }
 0x4ca   :  { %v1388_v27 = vadd.f32 %v1387_v17, %v1386_v53  ;;  %v1411_v50 = vadd.f32 %v1410_v0, %v1409_v23 }
 0x4cc   :  { %v1412_v24 = vrot.slane %v1411_v50, 2  ;;  %v1389_v21 = vrot.slane %v1388_v27, 1 }
 0x4ce   :  { %v1413_v44 = vadd.f32 %v1412_v24, %v1411_v50  ;;  %v1390_v43 = vadd.f32 %v1389_v21, %v1388_v27 }
 0x4d0   :  { %v1392_v10 = vadd.f32 %v1391_v58, %v1390_v43  ;;  %v1414_v16 = vrot.slane %v1413_v44, 1 }
 0x4d2   :  { %1394 = vst.msk [vmem:[#allocation6] sm:$0x1] %vm1393_vm2, %v1392_v10  ;;  %v1415_v13 = vadd.f32 %v1414_v16, %v1413_v44 }
 0x4d4   :  { %v1417_v61 = vadd.f32 %v1416_v54, %v1415_v13 }
 0x4d6   :  { %1418 = vst.msk [vmem:[#allocation6 + $0x1] sm:$0x1] %vm1393_vm2, %v1417_v61 }
 0x4d7   :  { %1650 = shalt.err (!%p1647_p4)
}
 0x4d8   :  { %s1651_s12 = scalar_lea.hbm %s2535_s9, 32 }
 0x4d9   :  { %p1652_p5 = scmp.ne.s32.totalorder %s2535_s9, %s1651_s12  ;;  %p1655_p6 = scmp.lt.u32.totalorder %s1651_s12, %s2535_s9 }
 0x4db   :  { %p1657_p7 = pnand %p1655_p6, %p1652_p5 }
 0x4dd   :  { %1660 = shalt.err (!%p1657_p7)
}
 0x4de   :  { %1430 = dma.vmem_to_hbm [thread:$0]  %s1428_s5, 32, %s2535_s9, [#allocation7]  }
 0x4df   :  { %1661 = dma.done.wait [#allocation7], 32  }
 0x4e0   :  { %1662 = vsyncadd [#allocation7], 4294967264 }
 0x4e1   :  { %1436 = vsyncpa [#allocation7], 1 }

</bundles_post_ra>
